<compile_context>
chip_gen: v7x
topology: tpu7x:2x2x1
jax: 0.10.0
libtpu: 0.0.40
codegen_flags: <defaults>
</compile_context>

<pallas_src>
import functools

import jax
import jax.numpy as jnp
import numpy as np
from jax.experimental import pallas as pl
from jax.experimental.pallas import tpu as pltpu


# ----------------------------------------------------------------------------
# JAX glue: bilinear resize, align_corners=True, on NCHW (== torch Upsample /
# F.interpolate(..., mode='bilinear', align_corners=True)).
# ----------------------------------------------------------------------------
def bilinear_resize_nchw(x, out_h, out_w, out_dtype=None):
    B, C, H, W = x.shape

    def coords(out_n, in_n):
        if out_n == 1 or in_n == 1:
            return jnp.zeros((out_n,), jnp.float32)
        return jnp.arange(out_n, dtype=jnp.float32) * ((in_n - 1) / (out_n - 1))

    ys = coords(out_h, H)
    xs = coords(out_w, W)
    y0 = jnp.floor(ys).astype(jnp.int32)
    y1 = jnp.minimum(y0 + 1, H - 1)
    wy = (ys - y0.astype(jnp.float32)).reshape(1, 1, out_h, 1)
    x0 = jnp.floor(xs).astype(jnp.int32)
    x1 = jnp.minimum(x0 + 1, W - 1)
    wx = (xs - x0.astype(jnp.float32)).reshape(1, 1, 1, out_w)

    xf = x.astype(jnp.float32)
    rows = xf[:, :, y0, :] * (1.0 - wy) + xf[:, :, y1, :] * wy
    out = rows[:, :, :, x0] * (1.0 - wx) + rows[:, :, :, x1] * wx
    return out if out_dtype is None else out.astype(out_dtype)


def upsample2x(x, out_dtype=None):
    B, C, H, W = x.shape
    return bilinear_resize_nchw(x, 2 * H, 2 * W, out_dtype)


# ----------------------------------------------------------------------------
# Transposed padded-flat layout helpers.
#
# A (C, H, W) feature is zero-padded to (C, H+2, W+2), flattened row-major to
# (C, Npad) with Npad=(H+2)*(W+2), and given zero guard lanes on both sides so
# every 3x3 conv tap (dy, dx) is the static lane window
#   [guard + off_t, guard + off_t + Npad),   off_t = (dy-1)*(W+2) + (dx-1).
# Channels live on sublanes, flat spatial on the 128-lane axis.
# ----------------------------------------------------------------------------
def _tap_offsets(W):
    return (-(W + 3), -(W + 2), -(W + 1), -1, 0, 1, W + 1, W + 2, W + 3)


def _layout_dims(H, W):
    npad = (H + 2) * (W + 2)
    guard = max(128, ((W + 3 + 127) // 128) * 128)                # lane-aligned left guard
    next_len = ((guard + npad + (W + 3) + 127) // 128) * 128      # total extended lanes
    return npad, guard, next_len


def _ext_flat(x, guard, next_len):          # (B, C, H, W) -> (B, C, next_len)
    B, C, H, W = x.shape
    npad = (H + 2) * (W + 2)
    xp = jnp.pad(x, ((0, 0), (0, 0), (1, 1), (1, 1)))
    flat = xp.reshape(B, C, npad)
    return jnp.pad(flat, ((0, 0), (0, 0), (guard, next_len - guard - npad)))


def _pad_flat(x):                           # (B, C, H, W) -> (B, C, Npad), zeros on pad ring
    B, C, H, W = x.shape
    xp = jnp.pad(x, ((0, 0), (0, 0), (1, 1), (1, 1)))
    return xp.reshape(B, C, (H + 2) * (W + 2))


# ----------------------------------------------------------------------------
# Fused decoder kernel: 3x (concat + 3x3 ConvBR) + collapsed linear head.
# ----------------------------------------------------------------------------
def _decoder_kernel(rm_ref, f4_ref, f3_ref, f2_ref, f1_ref,
                    w_ref, sh_ref, head_ref,
                    o_ref,
                    col_ref, s1_ref, s2_ref,
                    *, C, H, W, guard, npad):
    C2 = 2 * C
    next_len = s1_ref.shape[1]
    offs = _tap_offsets(W)

    ring = rm_ref[0:1, :]                     # (1, Npad) 1 at real pixels, 0 on pad ring
    m_row = rm_ref[1:2, :]                    # (1, Npad) resized user mask (0 on pad ring)

    def build_cols(a_ref, b_ref):
        # im2col into VMEM: col[t*2C + i, q] = cat(a, b)[i, q + off_t]
        for t, off in enumerate(offs):
            col_ref[pl.ds(t * C2, C), :] = (
                a_ref[:, pl.ds(guard + off, npad)].astype(jnp.float32))
            col_ref[pl.ds(t * C2 + C, C), :] = (
                b_ref[:, pl.ds(guard + off, npad)].astype(jnp.float32))

    def conv(stage):
        # One MXU dot per conv: (C, 18C) @ (18C, Npad), f32 accumulate.
        acc = jnp.dot(w_ref[stage], col_ref[...], preferred_element_type=jnp.float32)
        return ring * jnp.maximum(acc + sh_ref[stage], 0.0)          # folded-BN shift + ReLU

    def stash(s_ref, fused):
        # Zero ONLY the guard lane windows; interior is fully overwritten.
        s_ref[:, 0:guard] = jnp.zeros((C, guard), jnp.float32)
        s_ref[:, guard + npad:next_len] = jnp.zeros((C, next_len - guard - npad), jnp.float32)
        s_ref[:, guard:guard + npad] = fused

    # fusion_conv1(cat([f4, f3]))
    build_cols(f4_ref, f3_ref)
    fused1 = conv(0)
    stash(s1_ref, fused1)

    # fusion_conv2(cat([fused1, f2]))
    build_cols(s1_ref, f2_ref)
    fused2 = conv(1)
    stash(s2_ref, fused2)

    # fusion_conv3(cat([fused2, f1]))
    build_cols(s2_ref, f1_ref)
    fused3 = conv(2)

    # Head: 1x1 convs -> mask multiply -> global avg pool -> fc, collapsed (exact:
    # everything up to the softmax is linear).
    inv_hw = 1.0 / float(H * W)
    proj = jnp.dot(head_ref[:, 0:C], fused3, preferred_element_type=jnp.float32)   # (5, Npad)
    pooled = jnp.sum(proj * m_row, axis=1, keepdims=True) * inv_hw                 # (5, 1)
    m_mean = jnp.sum(m_row, axis=1, keepdims=True) * inv_hw                        # (1, 1)
    logits = pooled + m_mean * head_ref[:, C:C + 1] + head_ref[:, C + 1:C + 2]     # (5, 1)
    z = logits - jnp.max(logits, axis=0, keepdims=True)
    e = jnp.exp(z)
    o_ref[...] = e / jnp.sum(e, axis=0, keepdims=True)                             # Softmax(dim=1)


# ----------------------------------------------------------------------------
# Host-side parameter folding / packing.
# ----------------------------------------------------------------------------
def _prepare_params(p, C):
    K9 = 9 * 2 * C

    def fold_stack(cv):
        w = cv["w"] * cv["scale"][None, None, None, :]            # BN scale folded, (3,3,2C,C)
        w9 = w.reshape(9, 2 * C, C)                               # (tap, cin, cout)
        return jnp.transpose(w9, (2, 0, 1)).reshape(C, K9)        # (cout, tap*2C + cin)

    wstk = jnp.stack([fold_stack(p["fusion_conv1"]),
                      fold_stack(p["fusion_conv2"]),
                      fold_stack(p["fusion_conv3"])], axis=0).astype(jnp.float32)   # (3, C, 18C)
    shifts = jnp.stack([p["fusion_conv1"]["shift"],
                        p["fusion_conv2"]["shift"],
                        p["fusion_conv3"]["shift"]], axis=0).reshape(3, C, 1)
    shifts = shifts.astype(jnp.float32)

    # out = ((x@W1+b1)@W2+b2)@W3+b3 ; pool & mask multiply are linear ; fc is linear.
    weff = p["w_out1"] @ p["w_out2"] @ p["w_out"]                                     # (C, 5)
    beff = (p["b_out1"] @ p["w_out2"] @ p["w_out"]
            + p["b_out2"] @ p["w_out"] + p["b_out"])                                  # (1, 5)
    whead = weff @ p["fc_w"]                                                          # (C, 5)
    bmask = beff @ p["fc_w"]                                                          # (1, 5)
    bfc = p["fc_b"]                                                                   # (1, 5)
    head = jnp.concatenate([whead.T, bmask.T, bfc.T], axis=1).astype(jnp.float32)     # (5, C+2)
    return wstk, shifts, head


# ----------------------------------------------------------------------------
# Fused decoder pallas_call wrapper.
# ----------------------------------------------------------------------------
def fused_decoder(params, f4u, f3u, f2u, f1b, mask_r):
    B, C, H, W = f1b.shape
    npad, guard, next_len = _layout_dims(H, W)
    K9 = 9 * 2 * C

    # Features already bf16 (cast at the last upsample lerp); pads stay bf16.
    f4e = _ext_flat(f4u, guard, next_len)
    f3e = _ext_flat(f3u, guard, next_len)
    f2e = _ext_flat(f2u, guard, next_len)
    f1e = _ext_flat(f1b, guard, next_len)

    ring = jnp.zeros((H + 2, W + 2), jnp.float32).at[1:H + 1, 1:W + 1].set(1.0)
    ring = jnp.broadcast_to(ring.reshape(1, 1, npad), (B, 1, npad))
    m_flat = _pad_flat(mask_r.astype(jnp.float32))                  # (B, 1, Npad)
    rm = jnp.concatenate([ring, m_flat], axis=1)                    # (B, 2, Npad)

    wstk, shifts, head = _prepare_params(params, C)

    kernel = functools.partial(_decoder_kernel, C=C, H=H, W=W, guard=guard, npad=npad)

    def per_batch(shape):
        return pl.BlockSpec((None,) + shape, lambda b, _n=len(shape): (b,) + (0,) * _n)

    def shared(shape):
        return pl.BlockSpec(shape, lambda b, _n=len(shape): (0,) * _n)

    args = (rm, f4e, f3e, f2e, f1e, wstk, shifts, head)

    # VMEM residency: double-buffered per-step blocks + persistent scratch + slack.
    def _blk_bytes(a, per_b=True):
        shp = a.shape[1:] if per_b else a.shape
        return int(np.prod(shp)) * a.dtype.itemsize

    step_bytes = (_blk_bytes(rm) + _blk_bytes(f4e) + _blk_bytes(f3e) + _blk_bytes(f2e)
                  + _blk_bytes(f1e) + _blk_bytes(wstk, False) + _blk_bytes(shifts, False)
                  + _blk_bytes(head, False) + 5 * 4)
    scratch_bytes = (K9 * npad + 2 * C * next_len) * 4
    vmem_limit = int(2 * step_bytes + scratch_bytes + (4 << 20))

    flops = int(B * (3 * 2 * C * K9 * npad + 2 * 5 * C * npad + 10 * C * npad))
    bytes_accessed = int(sum(int(np.prod(a.shape)) * a.dtype.itemsize for a in args) + B * 5 * 4)

    out = pl.pallas_call(
        kernel,
        out_shape=jax.ShapeDtypeStruct((B, 5, 1), jnp.float32),
        grid=(B,),
        in_specs=[
            per_batch((2, npad)),            # [ring ; resized mask], padded-flat rows
            per_batch((C, next_len)),        # f4 (upsampled, extended layout)
            per_batch((C, next_len)),        # f3 (upsampled)
            per_batch((C, next_len)),        # f2 (upsampled)
            per_batch((C, next_len)),        # f1
            shared((3, C, K9)),              # stacked folded conv weights
            shared((3, C, 1)),               # folded BN shifts
            shared((5, C + 2)),              # collapsed head [Whead^T | bmask^T | bfc^T]
        ],
        out_specs=pl.BlockSpec((None, 5, 1), lambda b: (b, 0, 0)),
        scratch_shapes=[pltpu.VMEM((K9, npad), jnp.float32),        # shared im2col
                        pltpu.VMEM((C, next_len), jnp.float32),     # fused1 (extended)
                        pltpu.VMEM((C, next_len), jnp.float32)],    # fused2 (extended)
        compiler_params=pltpu.CompilerParams(
            dimension_semantics=("parallel",),
            vmem_limit_bytes=vmem_limit),
        cost_estimate=pl.CostEstimate(flops=flops,
                                      transcendentals=int(B * 5),
                                      bytes_accessed=bytes_accessed),
    )(*args)
    return out.reshape(B, 5)


# ----------------------------------------------------------------------------
# Parameter construction (deterministic, synthetic).
# ----------------------------------------------------------------------------
def init_params(key, channel):
    C = channel
    ks = list(jax.random.split(key, 16))
    nrm = lambda k, shp, s=0.1: (s * jax.random.normal(k, shp)).astype(jnp.float32)

    def convbr(k, cin, cout):
        k1, k2, k3, k4, k5 = jax.random.split(k, 5)
        w = nrm(k1, (3, 3, cin, cout))
        gamma = 1.0 + nrm(k2, (cout,), 0.05)
        beta = nrm(k3, (cout,), 0.05)
        run_mean = nrm(k4, (cout,), 0.05)
        run_var = 1.0 + 0.1 * jnp.abs(jax.random.normal(k5, (cout,))).astype(jnp.float32)
        eps = 1e-5
        scale = gamma / jnp.sqrt(run_var + eps)
        shift = beta - run_mean * scale
        return {"w": w, "scale": scale, "shift": shift}

    p = {}
    p["fusion_conv1"] = convbr(ks[0], 2 * C, C)
    p["fusion_conv2"] = convbr(ks[1], 2 * C, C)
    p["fusion_conv3"] = convbr(ks[2], 2 * C, C)
    # 1x1 convs stored as (Cin, Cout) matrices; biases as (1, Cout).
    p["w_out1"] = nrm(ks[3], (C, 2 * C));  p["b_out1"] = nrm(ks[4], (1, 2 * C))
    p["w_out2"] = nrm(ks[5], (2 * C, C));  p["b_out2"] = nrm(ks[6], (1, C))
    p["w_out"]  = nrm(ks[7], (C, 5));      p["b_out"]  = nrm(ks[8], (1, 5))
    # nn.Linear(5,5): y = x @ W.T + b ; store the (in, out) = W.T form directly.
    p["fc_w"] = nrm(ks[9], (5, 5));        p["fc_b"] = nrm(ks[10], (1, 5))
    return p


# ----------------------------------------------------------------------------
# Full forward (inputs NCHW, like PyTorch).
# ----------------------------------------------------------------------------
@jax.jit
def simple_decoder_forward(params, f1, f2, f3, f4, mask):
    f1 = f1.astype(jnp.float32)
    B, C, H, W = f1.shape

    # Upsample cascades in f32; the last lerp emits bf16 directly (halved HBM).
    f2u = upsample2x(f2.astype(jnp.float32), jnp.bfloat16)
    f3u = upsample2x(upsample2x(f3.astype(jnp.float32)), jnp.bfloat16)
    f4u = upsample2x(upsample2x(upsample2x(f4.astype(jnp.float32))), jnp.bfloat16)
    f1b = f1.astype(jnp.bfloat16)

    mask_r = bilinear_resize_nchw(mask.astype(jnp.float32), H, W)   # (B,1,H,W) f32
    return fused_decoder(params, f4u, f3u, f2u, f1b, mask_r)        # (B, 5) softmax probs


# ----------------------------------------------------------------------------
# Demo
# ----------------------------------------------------------------------------
if __name__ == "__main__":
    key = jax.random.PRNGKey(0)
    kp, k1, k2, k3, k4, km = jax.random.split(key, 6)

    B, C, H, W = 2, 4, 16, 16
    params = init_params(kp, C)

    f1 = jax.random.normal(k1, (B, C, H, W), dtype=jnp.float32)
    f2 = jax.random.normal(k2, (B, C, H // 2, W // 2), dtype=jnp.float32)
    f3 = jax.random.normal(k3, (B, C, H // 4, W // 4), dtype=jnp.float32)
    f4 = jax.random.normal(k4, (B, C, H // 8, W // 8), dtype=jnp.float32)
    mask = jax.random.normal(km, (B, 1, 2 * H, 2 * W), dtype=jnp.float32)

    out = simple_decoder_forward(params, f1, f2, f3, f4, mask)
    out = jax.block_until_ready(out)

    assert out.shape == (B, 5), out.shape
    assert bool(jnp.all(jnp.isfinite(out)))
    assert bool(jnp.allclose(jnp.sum(out, axis=1), 1.0, atol=1e-5))
    print("KERNEL_OK")
</pallas_src>

<mosaic_0001>
module attributes {stable_mosaic.version = 11 : i64} {
  func.func @_decoder_kernel(%arg0: i32, %arg1: memref<1x2x324xf32, #tpu.memory_space<vmem>>, %arg2: memref<1x4x512xbf16, #tpu.memory_space<vmem>>, %arg3: memref<1x4x512xbf16, #tpu.memory_space<vmem>>, %arg4: memref<1x4x512xbf16, #tpu.memory_space<vmem>>, %arg5: memref<1x4x512xbf16, #tpu.memory_space<vmem>>, %arg6: memref<3x4x72xf32, #tpu.memory_space<vmem>>, %arg7: memref<3x4x1xf32, #tpu.memory_space<vmem>>, %arg8: memref<5x6xf32, #tpu.memory_space<vmem>>, %arg9: memref<1x5x1xf32, #tpu.memory_space<vmem>>, %arg10: memref<72x324xf32, #tpu.memory_space<vmem>>, %arg11: memref<4x512xf32, #tpu.memory_space<vmem>>, %arg12: memref<4x512xf32, #tpu.memory_space<vmem>>) attributes {dimension_semantics = [#tpu.dimension_semantics<parallel>], iteration_bounds = array<i64: 2>, scalar_prefetch = 0 : i64, scratch_operands = 3 : i64, tpu.core_type = #tpu.core_type<tc>, window_params = [{transform_indices = @transform_0, window_bounds = array<i64: 1, 2, 324>}, {transform_indices = @transform_1, window_bounds = array<i64: 1, 4, 512>}, {transform_indices = @transform_2, window_bounds = array<i64: 1, 4, 512>}, {transform_indices = @transform_3, window_bounds = array<i64: 1, 4, 512>}, {transform_indices = @transform_4, window_bounds = array<i64: 1, 4, 512>}, {pipeline_mode = #tpu.pipeline_mode<synchronous>, transform_indices = @transform_5, window_bounds = array<i64: 3, 4, 72>}, {pipeline_mode = #tpu.pipeline_mode<synchronous>, transform_indices = @transform_6, window_bounds = array<i64: 3, 4, 1>}, {pipeline_mode = #tpu.pipeline_mode<synchronous>, transform_indices = @transform_7, window_bounds = array<i64: 5, 6>}, {transform_indices = @transform_8, window_bounds = array<i64: 1, 5, 1>}]} {
    %c0 = arith.constant 0 : index
    %c0_0 = arith.constant 0 : index
    %c0_1 = arith.constant 0 : index
    %0 = vector.load %arg1[%c0, %c0_0, %c0_1] : memref<1x2x324xf32, #tpu.memory_space<vmem>>, vector<1x1x324xf32>
    %1 = vector.shape_cast %0 : vector<1x1x324xf32> to vector<1x324xf32>
    %c0_2 = arith.constant 0 : index
    %c1 = arith.constant 1 : index
    %c0_3 = arith.constant 0 : index
    %2 = vector.load %arg1[%c0_2, %c1, %c0_3] : memref<1x2x324xf32, #tpu.memory_space<vmem>>, vector<1x1x324xf32>
    %3 = vector.shape_cast %2 : vector<1x1x324xf32> to vector<1x324xf32>
    %c0_4 = arith.constant 0 : index
    %c0_5 = arith.constant 0 : index
    %c109 = arith.constant 109 : index
    %4 = vector.load %arg2[%c0_4, %c0_5, %c109] : memref<1x4x512xbf16, #tpu.memory_space<vmem>>, vector<1x4x324xbf16>
    %5 = vector.shape_cast %4 : vector<1x4x324xbf16> to vector<4x324xbf16>
    %6 = arith.extf %5 : vector<4x324xbf16> to vector<4x324xf32>
    %c0_6 = arith.constant 0 : index
    %c0_7 = arith.constant 0 : index
    %7 = vector.load %arg10[%c0_6, %c0_7] : memref<72x324xf32, #tpu.memory_space<vmem>>, vector<4x324xf32>
    tpu.vector_store %arg10[%c0_6, %c0_7], %6 {strides = array<i32>} : memref<72x324xf32, #tpu.memory_space<vmem>>, vector<4x324xf32>,
    %c0_8 = arith.constant 0 : index
    %c0_9 = arith.constant 0 : index
    %c109_10 = arith.constant 109 : index
    %8 = vector.load %arg3[%c0_8, %c0_9, %c109_10] : memref<1x4x512xbf16, #tpu.memory_space<vmem>>, vector<1x4x324xbf16>
    %9 = vector.shape_cast %8 : vector<1x4x324xbf16> to vector<4x324xbf16>
    %10 = arith.extf %9 : vector<4x324xbf16> to vector<4x324xf32>
    %c4 = arith.constant 4 : index
    %c0_11 = arith.constant 0 : index
    %11 = vector.load %arg10[%c4, %c0_11] : memref<72x324xf32, #tpu.memory_space<vmem>>, vector<4x324xf32>
    tpu.vector_store %arg10[%c4, %c0_11], %10 {strides = array<i32>} : memref<72x324xf32, #tpu.memory_space<vmem>>, vector<4x324xf32>,
    %c0_12 = arith.constant 0 : index
    %c0_13 = arith.constant 0 : index
    %c110 = arith.constant 110 : index
    %12 = vector.load %arg2[%c0_12, %c0_13, %c110] : memref<1x4x512xbf16, #tpu.memory_space<vmem>>, vector<1x4x324xbf16>
    %13 = vector.shape_cast %12 : vector<1x4x324xbf16> to vector<4x324xbf16>
    %14 = arith.extf %13 : vector<4x324xbf16> to vector<4x324xf32>
    %c8 = arith.constant 8 : index
    %c0_14 = arith.constant 0 : index
    %15 = vector.load %arg10[%c8, %c0_14] : memref<72x324xf32, #tpu.memory_space<vmem>>, vector<4x324xf32>
    tpu.vector_store %arg10[%c8, %c0_14], %14 {strides = array<i32>} : memref<72x324xf32, #tpu.memory_space<vmem>>, vector<4x324xf32>,
    %c0_15 = arith.constant 0 : index
    %c0_16 = arith.constant 0 : index
    %c110_17 = arith.constant 110 : index
    %16 = vector.load %arg3[%c0_15, %c0_16, %c110_17] : memref<1x4x512xbf16, #tpu.memory_space<vmem>>, vector<1x4x324xbf16>
    %17 = vector.shape_cast %16 : vector<1x4x324xbf16> to vector<4x324xbf16>
    %18 = arith.extf %17 : vector<4x324xbf16> to vector<4x324xf32>
    %c12 = arith.constant 12 : index
    %c0_18 = arith.constant 0 : index
    %19 = vector.load %arg10[%c12, %c0_18] : memref<72x324xf32, #tpu.memory_space<vmem>>, vector<4x324xf32>
    tpu.vector_store %arg10[%c12, %c0_18], %18 {strides = array<i32>} : memref<72x324xf32, #tpu.memory_space<vmem>>, vector<4x324xf32>,
    %c0_19 = arith.constant 0 : index
    %c0_20 = arith.constant 0 : index
    %c111 = arith.constant 111 : index
    %20 = vector.load %arg2[%c0_19, %c0_20, %c111] : memref<1x4x512xbf16, #tpu.memory_space<vmem>>, vector<1x4x324xbf16>
    %21 = vector.shape_cast %20 : vector<1x4x324xbf16> to vector<4x324xbf16>
    %22 = arith.extf %21 : vector<4x324xbf16> to vector<4x324xf32>
    %c16 = arith.constant 16 : index
    %c0_21 = arith.constant 0 : index
    %23 = vector.load %arg10[%c16, %c0_21] : memref<72x324xf32, #tpu.memory_space<vmem>>, vector<4x324xf32>
    tpu.vector_store %arg10[%c16, %c0_21], %22 {strides = array<i32>} : memref<72x324xf32, #tpu.memory_space<vmem>>, vector<4x324xf32>,
    %c0_22 = arith.constant 0 : index
    %c0_23 = arith.constant 0 : index
    %c111_24 = arith.constant 111 : index
    %24 = vector.load %arg3[%c0_22, %c0_23, %c111_24] : memref<1x4x512xbf16, #tpu.memory_space<vmem>>, vector<1x4x324xbf16>
    %25 = vector.shape_cast %24 : vector<1x4x324xbf16> to vector<4x324xbf16>
    %26 = arith.extf %25 : vector<4x324xbf16> to vector<4x324xf32>
    %c20 = arith.constant 20 : index
    %c0_25 = arith.constant 0 : index
    %27 = vector.load %arg10[%c20, %c0_25] : memref<72x324xf32, #tpu.memory_space<vmem>>, vector<4x324xf32>
    tpu.vector_store %arg10[%c20, %c0_25], %26 {strides = array<i32>} : memref<72x324xf32, #tpu.memory_space<vmem>>, vector<4x324xf32>,
    %c0_26 = arith.constant 0 : index
    %c0_27 = arith.constant 0 : index
    %c127 = arith.constant 127 : index
    %28 = vector.load %arg2[%c0_26, %c0_27, %c127] : memref<1x4x512xbf16, #tpu.memory_space<vmem>>, vector<1x4x324xbf16>
    %29 = vector.shape_cast %28 : vector<1x4x324xbf16> to vector<4x324xbf16>
    %30 = arith.extf %29 : vector<4x324xbf16> to vector<4x324xf32>
    %c24 = arith.constant 24 : index
    %c0_28 = arith.constant 0 : index
    %31 = vector.load %arg10[%c24, %c0_28] : memref<72x324xf32, #tpu.memory_space<vmem>>, vector<4x324xf32>
    tpu.vector_store %arg10[%c24, %c0_28], %30 {strides = array<i32>} : memref<72x324xf32, #tpu.memory_space<vmem>>, vector<4x324xf32>,
    %c0_29 = arith.constant 0 : index
    %c0_30 = arith.constant 0 : index
    %c127_31 = arith.constant 127 : index
    %32 = vector.load %arg3[%c0_29, %c0_30, %c127_31] : memref<1x4x512xbf16, #tpu.memory_space<vmem>>, vector<1x4x324xbf16>
    %33 = vector.shape_cast %32 : vector<1x4x324xbf16> to vector<4x324xbf16>
    %34 = arith.extf %33 : vector<4x324xbf16> to vector<4x324xf32>
    %c28 = arith.constant 28 : index
    %c0_32 = arith.constant 0 : index
    %35 = vector.load %arg10[%c28, %c0_32] : memref<72x324xf32, #tpu.memory_space<vmem>>, vector<4x324xf32>
    tpu.vector_store %arg10[%c28, %c0_32], %34 {strides = array<i32>} : memref<72x324xf32, #tpu.memory_space<vmem>>, vector<4x324xf32>,
    %c0_33 = arith.constant 0 : index
    %c0_34 = arith.constant 0 : index
    %c128 = arith.constant 128 : index
    %36 = vector.load %arg2[%c0_33, %c0_34, %c128] : memref<1x4x512xbf16, #tpu.memory_space<vmem>>, vector<1x4x324xbf16>
    %37 = vector.shape_cast %36 : vector<1x4x324xbf16> to vector<4x324xbf16>
    %38 = arith.extf %37 : vector<4x324xbf16> to vector<4x324xf32>
    %c32 = arith.constant 32 : index
    %c0_35 = arith.constant 0 : index
    %39 = vector.load %arg10[%c32, %c0_35] : memref<72x324xf32, #tpu.memory_space<vmem>>, vector<4x324xf32>
    tpu.vector_store %arg10[%c32, %c0_35], %38 {strides = array<i32>} : memref<72x324xf32, #tpu.memory_space<vmem>>, vector<4x324xf32>,
    %c0_36 = arith.constant 0 : index
    %c0_37 = arith.constant 0 : index
    %c128_38 = arith.constant 128 : index
    %40 = vector.load %arg3[%c0_36, %c0_37, %c128_38] : memref<1x4x512xbf16, #tpu.memory_space<vmem>>, vector<1x4x324xbf16>
    %41 = vector.shape_cast %40 : vector<1x4x324xbf16> to vector<4x324xbf16>
    %42 = arith.extf %41 : vector<4x324xbf16> to vector<4x324xf32>
    %c36 = arith.constant 36 : index
    %c0_39 = arith.constant 0 : index
    %43 = vector.load %arg10[%c36, %c0_39] : memref<72x324xf32, #tpu.memory_space<vmem>>, vector<4x324xf32>
    tpu.vector_store %arg10[%c36, %c0_39], %42 {strides = array<i32>} : memref<72x324xf32, #tpu.memory_space<vmem>>, vector<4x324xf32>,
    %c0_40 = arith.constant 0 : index
    %c0_41 = arith.constant 0 : index
    %c129 = arith.constant 129 : index
    %44 = vector.load %arg2[%c0_40, %c0_41, %c129] : memref<1x4x512xbf16, #tpu.memory_space<vmem>>, vector<1x4x324xbf16>
    %45 = vector.shape_cast %44 : vector<1x4x324xbf16> to vector<4x324xbf16>
    %46 = arith.extf %45 : vector<4x324xbf16> to vector<4x324xf32>
    %c40 = arith.constant 40 : index
    %c0_42 = arith.constant 0 : index
    %47 = vector.load %arg10[%c40, %c0_42] : memref<72x324xf32, #tpu.memory_space<vmem>>, vector<4x324xf32>
    tpu.vector_store %arg10[%c40, %c0_42], %46 {strides = array<i32>} : memref<72x324xf32, #tpu.memory_space<vmem>>, vector<4x324xf32>,
    %c0_43 = arith.constant 0 : index
    %c0_44 = arith.constant 0 : index
    %c129_45 = arith.constant 129 : index
    %48 = vector.load %arg3[%c0_43, %c0_44, %c129_45] : memref<1x4x512xbf16, #tpu.memory_space<vmem>>, vector<1x4x324xbf16>
    %49 = vector.shape_cast %48 : vector<1x4x324xbf16> to vector<4x324xbf16>
    %50 = arith.extf %49 : vector<4x324xbf16> to vector<4x324xf32>
    %c44 = arith.constant 44 : index
    %c0_46 = arith.constant 0 : index
    %51 = vector.load %arg10[%c44, %c0_46] : memref<72x324xf32, #tpu.memory_space<vmem>>, vector<4x324xf32>
    tpu.vector_store %arg10[%c44, %c0_46], %50 {strides = array<i32>} : memref<72x324xf32, #tpu.memory_space<vmem>>, vector<4x324xf32>,
    %c0_47 = arith.constant 0 : index
    %c0_48 = arith.constant 0 : index
    %c145 = arith.constant 145 : index
    %52 = vector.load %arg2[%c0_47, %c0_48, %c145] : memref<1x4x512xbf16, #tpu.memory_space<vmem>>, vector<1x4x324xbf16>
    %53 = vector.shape_cast %52 : vector<1x4x324xbf16> to vector<4x324xbf16>
    %54 = arith.extf %53 : vector<4x324xbf16> to vector<4x324xf32>
    %c48 = arith.constant 48 : index
    %c0_49 = arith.constant 0 : index
    %55 = vector.load %arg10[%c48, %c0_49] : memref<72x324xf32, #tpu.memory_space<vmem>>, vector<4x324xf32>
    tpu.vector_store %arg10[%c48, %c0_49], %54 {strides = array<i32>} : memref<72x324xf32, #tpu.memory_space<vmem>>, vector<4x324xf32>,
    %c0_50 = arith.constant 0 : index
    %c0_51 = arith.constant 0 : index
    %c145_52 = arith.constant 145 : index
    %56 = vector.load %arg3[%c0_50, %c0_51, %c145_52] : memref<1x4x512xbf16, #tpu.memory_space<vmem>>, vector<1x4x324xbf16>
    %57 = vector.shape_cast %56 : vector<1x4x324xbf16> to vector<4x324xbf16>
    %58 = arith.extf %57 : vector<4x324xbf16> to vector<4x324xf32>
    %c52 = arith.constant 52 : index
    %c0_53 = arith.constant 0 : index
    %59 = vector.load %arg10[%c52, %c0_53] : memref<72x324xf32, #tpu.memory_space<vmem>>, vector<4x324xf32>
    tpu.vector_store %arg10[%c52, %c0_53], %58 {strides = array<i32>} : memref<72x324xf32, #tpu.memory_space<vmem>>, vector<4x324xf32>,
    %c0_54 = arith.constant 0 : index
    %c0_55 = arith.constant 0 : index
    %c146 = arith.constant 146 : index
    %60 = vector.load %arg2[%c0_54, %c0_55, %c146] : memref<1x4x512xbf16, #tpu.memory_space<vmem>>, vector<1x4x324xbf16>
    %61 = vector.shape_cast %60 : vector<1x4x324xbf16> to vector<4x324xbf16>
    %62 = arith.extf %61 : vector<4x324xbf16> to vector<4x324xf32>
    %c56 = arith.constant 56 : index
    %c0_56 = arith.constant 0 : index
    %63 = vector.load %arg10[%c56, %c0_56] : memref<72x324xf32, #tpu.memory_space<vmem>>, vector<4x324xf32>
    tpu.vector_store %arg10[%c56, %c0_56], %62 {strides = array<i32>} : memref<72x324xf32, #tpu.memory_space<vmem>>, vector<4x324xf32>,
    %c0_57 = arith.constant 0 : index
    %c0_58 = arith.constant 0 : index
    %c146_59 = arith.constant 146 : index
    %64 = vector.load %arg3[%c0_57, %c0_58, %c146_59] : memref<1x4x512xbf16, #tpu.memory_space<vmem>>, vector<1x4x324xbf16>
    %65 = vector.shape_cast %64 : vector<1x4x324xbf16> to vector<4x324xbf16>
    %66 = arith.extf %65 : vector<4x324xbf16> to vector<4x324xf32>
    %c60 = arith.constant 60 : index
    %c0_60 = arith.constant 0 : index
    %67 = vector.load %arg10[%c60, %c0_60] : memref<72x324xf32, #tpu.memory_space<vmem>>, vector<4x324xf32>
    tpu.vector_store %arg10[%c60, %c0_60], %66 {strides = array<i32>} : memref<72x324xf32, #tpu.memory_space<vmem>>, vector<4x324xf32>,
    %c0_61 = arith.constant 0 : index
    %c0_62 = arith.constant 0 : index
    %c147 = arith.constant 147 : index
    %68 = vector.load %arg2[%c0_61, %c0_62, %c147] : memref<1x4x512xbf16, #tpu.memory_space<vmem>>, vector<1x4x324xbf16>
    %69 = vector.shape_cast %68 : vector<1x4x324xbf16> to vector<4x324xbf16>
    %70 = arith.extf %69 : vector<4x324xbf16> to vector<4x324xf32>
    %c64 = arith.constant 64 : index
    %c0_63 = arith.constant 0 : index
    %71 = vector.load %arg10[%c64, %c0_63] : memref<72x324xf32, #tpu.memory_space<vmem>>, vector<4x324xf32>
    tpu.vector_store %arg10[%c64, %c0_63], %70 {strides = array<i32>} : memref<72x324xf32, #tpu.memory_space<vmem>>, vector<4x324xf32>,
    %c0_64 = arith.constant 0 : index
    %c0_65 = arith.constant 0 : index
    %c147_66 = arith.constant 147 : index
    %72 = vector.load %arg3[%c0_64, %c0_65, %c147_66] : memref<1x4x512xbf16, #tpu.memory_space<vmem>>, vector<1x4x324xbf16>
    %73 = vector.shape_cast %72 : vector<1x4x324xbf16> to vector<4x324xbf16>
    %74 = arith.extf %73 : vector<4x324xbf16> to vector<4x324xf32>
    %c68 = arith.constant 68 : index
    %c0_67 = arith.constant 0 : index
    %75 = vector.load %arg10[%c68, %c0_67] : memref<72x324xf32, #tpu.memory_space<vmem>>, vector<4x324xf32>
    tpu.vector_store %arg10[%c68, %c0_67], %74 {strides = array<i32>} : memref<72x324xf32, #tpu.memory_space<vmem>>, vector<4x324xf32>,
    %c0_68 = arith.constant 0 : index
    %c0_69 = arith.constant 0 : index
    %c0_70 = arith.constant 0 : index
    %76 = vector.load %arg6[%c0_68, %c0_69, %c0_70] : memref<3x4x72xf32, #tpu.memory_space<vmem>>, vector<1x4x72xf32>
    %77 = vector.shape_cast %76 : vector<1x4x72xf32> to vector<4x72xf32>
    %c0_71 = arith.constant 0 : index
    %c0_72 = arith.constant 0 : index
    %78 = vector.load %arg10[%c0_71, %c0_72] : memref<72x324xf32, #tpu.memory_space<vmem>>, vector<72x324xf32>
    %cst = arith.constant dense<0.000000e+00> : vector<4x324xf32>
    %79 = tpu.matmul %77, %78, %cst {dimension_numbers = #tpu.dot_dimension_numbers<[1], [0], [0], [1], [0, 0, 1, 1], [], []>} : vector<4x72xf32>, vector<72x324xf32>, vector<4x324xf32> -> vector<4x324xf32>
    %c0_73 = arith.constant 0 : index
    %c0_74 = arith.constant 0 : index
    %c0_75 = arith.constant 0 : index
    %80 = vector.load %arg7[%c0_73, %c0_74, %c0_75] : memref<3x4x1xf32, #tpu.memory_space<vmem>>, vector<1x4x1xf32>
    %81 = vector.shape_cast %80 : vector<1x4x1xf32> to vector<4x1xf32>
    %82 = vector.broadcast %81 : vector<4x1xf32> to vector<4x324xf32>
    %83 = arith.addf %79, %82 : vector<4x324xf32>
    %cst_76 = arith.constant 0.000000e+00 : f32
    %84 = vector.broadcast %cst_76 : f32 to vector<4x324xf32>
    %85 = arith.maximumf %83, %84 : vector<4x324xf32>
    %86 = vector.broadcast %1 : vector<1x324xf32> to vector<4x324xf32>
    %87 = arith.mulf %86, %85 : vector<4x324xf32>
    %cst_77 = arith.constant 0.000000e+00 : f32
    %88 = vector.broadcast %cst_77 : f32 to vector<4x128xf32>
    %c0_78 = arith.constant 0 : index
    %c0_79 = arith.constant 0 : index
    %89 = vector.load %arg11[%c0_78, %c0_79] : memref<4x512xf32, #tpu.memory_space<vmem>>, vector<4x128xf32>
    tpu.vector_store %arg11[%c0_78, %c0_79], %88 {strides = array<i32>} : memref<4x512xf32, #tpu.memory_space<vmem>>, vector<4x128xf32>,
    %cst_80 = arith.constant 0.000000e+00 : f32
    %90 = vector.broadcast %cst_80 : f32 to vector<4x60xf32>
    %c0_81 = arith.constant 0 : index
    %c452 = arith.constant 452 : index
    %91 = vector.load %arg11[%c0_81, %c452] : memref<4x512xf32, #tpu.memory_space<vmem>>, vector<4x60xf32>
    tpu.vector_store %arg11[%c0_81, %c452], %90 {strides = array<i32>} : memref<4x512xf32, #tpu.memory_space<vmem>>, vector<4x60xf32>,
    %c0_82 = arith.constant 0 : index
    %c128_83 = arith.constant 128 : index
    %92 = vector.load %arg11[%c0_82, %c128_83] : memref<4x512xf32, #tpu.memory_space<vmem>>, vector<4x324xf32>
    tpu.vector_store %arg11[%c0_82, %c128_83], %87 {strides = array<i32>} : memref<4x512xf32, #tpu.memory_space<vmem>>, vector<4x324xf32>,
    %c0_84 = arith.constant 0 : index
    %c109_85 = arith.constant 109 : index
    %93 = vector.load %arg11[%c0_84, %c109_85] : memref<4x512xf32, #tpu.memory_space<vmem>>, vector<4x324xf32>
    %c0_86 = arith.constant 0 : index
    %c0_87 = arith.constant 0 : index
    %94 = vector.load %arg10[%c0_86, %c0_87] : memref<72x324xf32, #tpu.memory_space<vmem>>, vector<4x324xf32>
    tpu.vector_store %arg10[%c0_86, %c0_87], %93 {strides = array<i32>} : memref<72x324xf32, #tpu.memory_space<vmem>>, vector<4x324xf32>,
    %c0_88 = arith.constant 0 : index
    %c0_89 = arith.constant 0 : index
    %c109_90 = arith.constant 109 : index
    %95 = vector.load %arg4[%c0_88, %c0_89, %c109_90] : memref<1x4x512xbf16, #tpu.memory_space<vmem>>, vector<1x4x324xbf16>
    %96 = vector.shape_cast %95 : vector<1x4x324xbf16> to vector<4x324xbf16>
    %97 = arith.extf %96 : vector<4x324xbf16> to vector<4x324xf32>
    %c4_91 = arith.constant 4 : index
    %c0_92 = arith.constant 0 : index
    %98 = vector.load %arg10[%c4_91, %c0_92] : memref<72x324xf32, #tpu.memory_space<vmem>>, vector<4x324xf32>
    tpu.vector_store %arg10[%c4_91, %c0_92], %97 {strides = array<i32>} : memref<72x324xf32, #tpu.memory_space<vmem>>, vector<4x324xf32>,
    %c0_93 = arith.constant 0 : index
    %c110_94 = arith.constant 110 : index
    %99 = vector.load %arg11[%c0_93, %c110_94] : memref<4x512xf32, #tpu.memory_space<vmem>>, vector<4x324xf32>
    %c8_95 = arith.constant 8 : index
    %c0_96 = arith.constant 0 : index
    %100 = vector.load %arg10[%c8_95, %c0_96] : memref<72x324xf32, #tpu.memory_space<vmem>>, vector<4x324xf32>
    tpu.vector_store %arg10[%c8_95, %c0_96], %99 {strides = array<i32>} : memref<72x324xf32, #tpu.memory_space<vmem>>, vector<4x324xf32>,
    %c0_97 = arith.constant 0 : index
    %c0_98 = arith.constant 0 : index
    %c110_99 = arith.constant 110 : index
    %101 = vector.load %arg4[%c0_97, %c0_98, %c110_99] : memref<1x4x512xbf16, #tpu.memory_space<vmem>>, vector<1x4x324xbf16>
    %102 = vector.shape_cast %101 : vector<1x4x324xbf16> to vector<4x324xbf16>
    %103 = arith.extf %102 : vector<4x324xbf16> to vector<4x324xf32>
    %c12_100 = arith.constant 12 : index
    %c0_101 = arith.constant 0 : index
    %104 = vector.load %arg10[%c12_100, %c0_101] : memref<72x324xf32, #tpu.memory_space<vmem>>, vector<4x324xf32>
    tpu.vector_store %arg10[%c12_100, %c0_101], %103 {strides = array<i32>} : memref<72x324xf32, #tpu.memory_space<vmem>>, vector<4x324xf32>,
    %c0_102 = arith.constant 0 : index
    %c111_103 = arith.constant 111 : index
    %105 = vector.load %arg11[%c0_102, %c111_103] : memref<4x512xf32, #tpu.memory_space<vmem>>, vector<4x324xf32>
    %c16_104 = arith.constant 16 : index
    %c0_105 = arith.constant 0 : index
    %106 = vector.load %arg10[%c16_104, %c0_105] : memref<72x324xf32, #tpu.memory_space<vmem>>, vector<4x324xf32>
    tpu.vector_store %arg10[%c16_104, %c0_105], %105 {strides = array<i32>} : memref<72x324xf32, #tpu.memory_space<vmem>>, vector<4x324xf32>,
    %c0_106 = arith.constant 0 : index
    %c0_107 = arith.constant 0 : index
    %c111_108 = arith.constant 111 : index
    %107 = vector.load %arg4[%c0_106, %c0_107, %c111_108] : memref<1x4x512xbf16, #tpu.memory_space<vmem>>, vector<1x4x324xbf16>
    %108 = vector.shape_cast %107 : vector<1x4x324xbf16> to vector<4x324xbf16>
    %109 = arith.extf %108 : vector<4x324xbf16> to vector<4x324xf32>
    %c20_109 = arith.constant 20 : index
    %c0_110 = arith.constant 0 : index
    %110 = vector.load %arg10[%c20_109, %c0_110] : memref<72x324xf32, #tpu.memory_space<vmem>>, vector<4x324xf32>
    tpu.vector_store %arg10[%c20_109, %c0_110], %109 {strides = array<i32>} : memref<72x324xf32, #tpu.memory_space<vmem>>, vector<4x324xf32>,
    %c0_111 = arith.constant 0 : index
    %c127_112 = arith.constant 127 : index
    %111 = vector.load %arg11[%c0_111, %c127_112] : memref<4x512xf32, #tpu.memory_space<vmem>>, vector<4x324xf32>
    %c24_113 = arith.constant 24 : index
    %c0_114 = arith.constant 0 : index
    %112 = vector.load %arg10[%c24_113, %c0_114] : memref<72x324xf32, #tpu.memory_space<vmem>>, vector<4x324xf32>
    tpu.vector_store %arg10[%c24_113, %c0_114], %111 {strides = array<i32>} : memref<72x324xf32, #tpu.memory_space<vmem>>, vector<4x324xf32>,
    %c0_115 = arith.constant 0 : index
    %c0_116 = arith.constant 0 : index
    %c127_117 = arith.constant 127 : index
    %113 = vector.load %arg4[%c0_115, %c0_116, %c127_117] : memref<1x4x512xbf16, #tpu.memory_space<vmem>>, vector<1x4x324xbf16>
    %114 = vector.shape_cast %113 : vector<1x4x324xbf16> to vector<4x324xbf16>
    %115 = arith.extf %114 : vector<4x324xbf16> to vector<4x324xf32>
    %c28_118 = arith.constant 28 : index
    %c0_119 = arith.constant 0 : index
    %116 = vector.load %arg10[%c28_118, %c0_119] : memref<72x324xf32, #tpu.memory_space<vmem>>, vector<4x324xf32>
    tpu.vector_store %arg10[%c28_118, %c0_119], %115 {strides = array<i32>} : memref<72x324xf32, #tpu.memory_space<vmem>>, vector<4x324xf32>,
    %c0_120 = arith.constant 0 : index
    %c128_121 = arith.constant 128 : index
    %117 = vector.load %arg11[%c0_120, %c128_121] : memref<4x512xf32, #tpu.memory_space<vmem>>, vector<4x324xf32>
    %c32_122 = arith.constant 32 : index
    %c0_123 = arith.constant 0 : index
    %118 = vector.load %arg10[%c32_122, %c0_123] : memref<72x324xf32, #tpu.memory_space<vmem>>, vector<4x324xf32>
    tpu.vector_store %arg10[%c32_122, %c0_123], %117 {strides = array<i32>} : memref<72x324xf32, #tpu.memory_space<vmem>>, vector<4x324xf32>,
    %c0_124 = arith.constant 0 : index
    %c0_125 = arith.constant 0 : index
    %c128_126 = arith.constant 128 : index
    %119 = vector.load %arg4[%c0_124, %c0_125, %c128_126] : memref<1x4x512xbf16, #tpu.memory_space<vmem>>, vector<1x4x324xbf16>
    %120 = vector.shape_cast %119 : vector<1x4x324xbf16> to vector<4x324xbf16>
    %121 = arith.extf %120 : vector<4x324xbf16> to vector<4x324xf32>
    %c36_127 = arith.constant 36 : index
    %c0_128 = arith.constant 0 : index
    %122 = vector.load %arg10[%c36_127, %c0_128] : memref<72x324xf32, #tpu.memory_space<vmem>>, vector<4x324xf32>
    tpu.vector_store %arg10[%c36_127, %c0_128], %121 {strides = array<i32>} : memref<72x324xf32, #tpu.memory_space<vmem>>, vector<4x324xf32>,
    %c0_129 = arith.constant 0 : index
    %c129_130 = arith.constant 129 : index
    %123 = vector.load %arg11[%c0_129, %c129_130] : memref<4x512xf32, #tpu.memory_space<vmem>>, vector<4x324xf32>
    %c40_131 = arith.constant 40 : index
    %c0_132 = arith.constant 0 : index
    %124 = vector.load %arg10[%c40_131, %c0_132] : memref<72x324xf32, #tpu.memory_space<vmem>>, vector<4x324xf32>
    tpu.vector_store %arg10[%c40_131, %c0_132], %123 {strides = array<i32>} : memref<72x324xf32, #tpu.memory_space<vmem>>, vector<4x324xf32>,
    %c0_133 = arith.constant 0 : index
    %c0_134 = arith.constant 0 : index
    %c129_135 = arith.constant 129 : index
    %125 = vector.load %arg4[%c0_133, %c0_134, %c129_135] : memref<1x4x512xbf16, #tpu.memory_space<vmem>>, vector<1x4x324xbf16>
    %126 = vector.shape_cast %125 : vector<1x4x324xbf16> to vector<4x324xbf16>
    %127 = arith.extf %126 : vector<4x324xbf16> to vector<4x324xf32>
    %c44_136 = arith.constant 44 : index
    %c0_137 = arith.constant 0 : index
    %128 = vector.load %arg10[%c44_136, %c0_137] : memref<72x324xf32, #tpu.memory_space<vmem>>, vector<4x324xf32>
    tpu.vector_store %arg10[%c44_136, %c0_137], %127 {strides = array<i32>} : memref<72x324xf32, #tpu.memory_space<vmem>>, vector<4x324xf32>,
    %c0_138 = arith.constant 0 : index
    %c145_139 = arith.constant 145 : index
    %129 = vector.load %arg11[%c0_138, %c145_139] : memref<4x512xf32, #tpu.memory_space<vmem>>, vector<4x324xf32>
    %c48_140 = arith.constant 48 : index
    %c0_141 = arith.constant 0 : index
    %130 = vector.load %arg10[%c48_140, %c0_141] : memref<72x324xf32, #tpu.memory_space<vmem>>, vector<4x324xf32>
    tpu.vector_store %arg10[%c48_140, %c0_141], %129 {strides = array<i32>} : memref<72x324xf32, #tpu.memory_space<vmem>>, vector<4x324xf32>,
    %c0_142 = arith.constant 0 : index
    %c0_143 = arith.constant 0 : index
    %c145_144 = arith.constant 145 : index
    %131 = vector.load %arg4[%c0_142, %c0_143, %c145_144] : memref<1x4x512xbf16, #tpu.memory_space<vmem>>, vector<1x4x324xbf16>
    %132 = vector.shape_cast %131 : vector<1x4x324xbf16> to vector<4x324xbf16>
    %133 = arith.extf %132 : vector<4x324xbf16> to vector<4x324xf32>
    %c52_145 = arith.constant 52 : index
    %c0_146 = arith.constant 0 : index
    %134 = vector.load %arg10[%c52_145, %c0_146] : memref<72x324xf32, #tpu.memory_space<vmem>>, vector<4x324xf32>
    tpu.vector_store %arg10[%c52_145, %c0_146], %133 {strides = array<i32>} : memref<72x324xf32, #tpu.memory_space<vmem>>, vector<4x324xf32>,
    %c0_147 = arith.constant 0 : index
    %c146_148 = arith.constant 146 : index
    %135 = vector.load %arg11[%c0_147, %c146_148] : memref<4x512xf32, #tpu.memory_space<vmem>>, vector<4x324xf32>
    %c56_149 = arith.constant 56 : index
    %c0_150 = arith.constant 0 : index
    %136 = vector.load %arg10[%c56_149, %c0_150] : memref<72x324xf32, #tpu.memory_space<vmem>>, vector<4x324xf32>
    tpu.vector_store %arg10[%c56_149, %c0_150], %135 {strides = array<i32>} : memref<72x324xf32, #tpu.memory_space<vmem>>, vector<4x324xf32>,
    %c0_151 = arith.constant 0 : index
    %c0_152 = arith.constant 0 : index
    %c146_153 = arith.constant 146 : index
    %137 = vector.load %arg4[%c0_151, %c0_152, %c146_153] : memref<1x4x512xbf16, #tpu.memory_space<vmem>>, vector<1x4x324xbf16>
    %138 = vector.shape_cast %137 : vector<1x4x324xbf16> to vector<4x324xbf16>
    %139 = arith.extf %138 : vector<4x324xbf16> to vector<4x324xf32>
    %c60_154 = arith.constant 60 : index
    %c0_155 = arith.constant 0 : index
    %140 = vector.load %arg10[%c60_154, %c0_155] : memref<72x324xf32, #tpu.memory_space<vmem>>, vector<4x324xf32>
    tpu.vector_store %arg10[%c60_154, %c0_155], %139 {strides = array<i32>} : memref<72x324xf32, #tpu.memory_space<vmem>>, vector<4x324xf32>,
    %c0_156 = arith.constant 0 : index
    %c147_157 = arith.constant 147 : index
    %141 = vector.load %arg11[%c0_156, %c147_157] : memref<4x512xf32, #tpu.memory_space<vmem>>, vector<4x324xf32>
    %c64_158 = arith.constant 64 : index
    %c0_159 = arith.constant 0 : index
    %142 = vector.load %arg10[%c64_158, %c0_159] : memref<72x324xf32, #tpu.memory_space<vmem>>, vector<4x324xf32>
    tpu.vector_store %arg10[%c64_158, %c0_159], %141 {strides = array<i32>} : memref<72x324xf32, #tpu.memory_space<vmem>>, vector<4x324xf32>,
    %c0_160 = arith.constant 0 : index
    %c0_161 = arith.constant 0 : index
    %c147_162 = arith.constant 147 : index
    %143 = vector.load %arg4[%c0_160, %c0_161, %c147_162] : memref<1x4x512xbf16, #tpu.memory_space<vmem>>, vector<1x4x324xbf16>
    %144 = vector.shape_cast %143 : vector<1x4x324xbf16> to vector<4x324xbf16>
    %145 = arith.extf %144 : vector<4x324xbf16> to vector<4x324xf32>
    %c68_163 = arith.constant 68 : index
    %c0_164 = arith.constant 0 : index
    %146 = vector.load %arg10[%c68_163, %c0_164] : memref<72x324xf32, #tpu.memory_space<vmem>>, vector<4x324xf32>
    tpu.vector_store %arg10[%c68_163, %c0_164], %145 {strides = array<i32>} : memref<72x324xf32, #tpu.memory_space<vmem>>, vector<4x324xf32>,
    %c1_165 = arith.constant 1 : index
    %c0_166 = arith.constant 0 : index
    %c0_167 = arith.constant 0 : index
    %147 = vector.load %arg6[%c1_165, %c0_166, %c0_167] : memref<3x4x72xf32, #tpu.memory_space<vmem>>, vector<1x4x72xf32>
    %148 = vector.shape_cast %147 : vector<1x4x72xf32> to vector<4x72xf32>
    %c0_168 = arith.constant 0 : index
    %c0_169 = arith.constant 0 : index
    %149 = vector.load %arg10[%c0_168, %c0_169] : memref<72x324xf32, #tpu.memory_space<vmem>>, vector<72x324xf32>
    %cst_170 = arith.constant dense<0.000000e+00> : vector<4x324xf32>
    %150 = tpu.matmul %148, %149, %cst_170 {dimension_numbers = #tpu.dot_dimension_numbers<[1], [0], [0], [1], [0, 0, 1, 1], [], []>} : vector<4x72xf32>, vector<72x324xf32>, vector<4x324xf32> -> vector<4x324xf32>
    %c1_171 = arith.constant 1 : index
    %c0_172 = arith.constant 0 : index
    %c0_173 = arith.constant 0 : index
    %151 = vector.load %arg7[%c1_171, %c0_172, %c0_173] : memref<3x4x1xf32, #tpu.memory_space<vmem>>, vector<1x4x1xf32>
    %152 = vector.shape_cast %151 : vector<1x4x1xf32> to vector<4x1xf32>
    %153 = vector.broadcast %152 : vector<4x1xf32> to vector<4x324xf32>
    %154 = arith.addf %150, %153 : vector<4x324xf32>
    %cst_174 = arith.constant 0.000000e+00 : f32
    %155 = vector.broadcast %cst_174 : f32 to vector<4x324xf32>
    %156 = arith.maximumf %154, %155 : vector<4x324xf32>
    %157 = vector.broadcast %1 : vector<1x324xf32> to vector<4x324xf32>
    %158 = arith.mulf %157, %156 : vector<4x324xf32>
    %cst_175 = arith.constant 0.000000e+00 : f32
    %159 = vector.broadcast %cst_175 : f32 to vector<4x128xf32>
    %c0_176 = arith.constant 0 : index
    %c0_177 = arith.constant 0 : index
    %160 = vector.load %arg12[%c0_176, %c0_177] : memref<4x512xf32, #tpu.memory_space<vmem>>, vector<4x128xf32>
    tpu.vector_store %arg12[%c0_176, %c0_177], %159 {strides = array<i32>} : memref<4x512xf32, #tpu.memory_space<vmem>>, vector<4x128xf32>,
    %cst_178 = arith.constant 0.000000e+00 : f32
    %161 = vector.broadcast %cst_178 : f32 to vector<4x60xf32>
    %c0_179 = arith.constant 0 : index
    %c452_180 = arith.constant 452 : index
    %162 = vector.load %arg12[%c0_179, %c452_180] : memref<4x512xf32, #tpu.memory_space<vmem>>, vector<4x60xf32>
    tpu.vector_store %arg12[%c0_179, %c452_180], %161 {strides = array<i32>} : memref<4x512xf32, #tpu.memory_space<vmem>>, vector<4x60xf32>,
    %c0_181 = arith.constant 0 : index
    %c128_182 = arith.constant 128 : index
    %163 = vector.load %arg12[%c0_181, %c128_182] : memref<4x512xf32, #tpu.memory_space<vmem>>, vector<4x324xf32>
    tpu.vector_store %arg12[%c0_181, %c128_182], %158 {strides = array<i32>} : memref<4x512xf32, #tpu.memory_space<vmem>>, vector<4x324xf32>,
    %c0_183 = arith.constant 0 : index
    %c109_184 = arith.constant 109 : index
    %164 = vector.load %arg12[%c0_183, %c109_184] : memref<4x512xf32, #tpu.memory_space<vmem>>, vector<4x324xf32>
    %c0_185 = arith.constant 0 : index
    %c0_186 = arith.constant 0 : index
    %165 = vector.load %arg10[%c0_185, %c0_186] : memref<72x324xf32, #tpu.memory_space<vmem>>, vector<4x324xf32>
    tpu.vector_store %arg10[%c0_185, %c0_186], %164 {strides = array<i32>} : memref<72x324xf32, #tpu.memory_space<vmem>>, vector<4x324xf32>,
    %c0_187 = arith.constant 0 : index
    %c0_188 = arith.constant 0 : index
    %c109_189 = arith.constant 109 : index
    %166 = vector.load %arg5[%c0_187, %c0_188, %c109_189] : memref<1x4x512xbf16, #tpu.memory_space<vmem>>, vector<1x4x324xbf16>
    %167 = vector.shape_cast %166 : vector<1x4x324xbf16> to vector<4x324xbf16>
    %168 = arith.extf %167 : vector<4x324xbf16> to vector<4x324xf32>
    %c4_190 = arith.constant 4 : index
    %c0_191 = arith.constant 0 : index
    %169 = vector.load %arg10[%c4_190, %c0_191] : memref<72x324xf32, #tpu.memory_space<vmem>>, vector<4x324xf32>
    tpu.vector_store %arg10[%c4_190, %c0_191], %168 {strides = array<i32>} : memref<72x324xf32, #tpu.memory_space<vmem>>, vector<4x324xf32>,
    %c0_192 = arith.constant 0 : index
    %c110_193 = arith.constant 110 : index
    %170 = vector.load %arg12[%c0_192, %c110_193] : memref<4x512xf32, #tpu.memory_space<vmem>>, vector<4x324xf32>
    %c8_194 = arith.constant 8 : index
    %c0_195 = arith.constant 0 : index
    %171 = vector.load %arg10[%c8_194, %c0_195] : memref<72x324xf32, #tpu.memory_space<vmem>>, vector<4x324xf32>
    tpu.vector_store %arg10[%c8_194, %c0_195], %170 {strides = array<i32>} : memref<72x324xf32, #tpu.memory_space<vmem>>, vector<4x324xf32>,
    %c0_196 = arith.constant 0 : index
    %c0_197 = arith.constant 0 : index
    %c110_198 = arith.constant 110 : index
    %172 = vector.load %arg5[%c0_196, %c0_197, %c110_198] : memref<1x4x512xbf16, #tpu.memory_space<vmem>>, vector<1x4x324xbf16>
    %173 = vector.shape_cast %172 : vector<1x4x324xbf16> to vector<4x324xbf16>
    %174 = arith.extf %173 : vector<4x324xbf16> to vector<4x324xf32>
    %c12_199 = arith.constant 12 : index
    %c0_200 = arith.constant 0 : index
    %175 = vector.load %arg10[%c12_199, %c0_200] : memref<72x324xf32, #tpu.memory_space<vmem>>, vector<4x324xf32>
    tpu.vector_store %arg10[%c12_199, %c0_200], %174 {strides = array<i32>} : memref<72x324xf32, #tpu.memory_space<vmem>>, vector<4x324xf32>,
    %c0_201 = arith.constant 0 : index
    %c111_202 = arith.constant 111 : index
    %176 = vector.load %arg12[%c0_201, %c111_202] : memref<4x512xf32, #tpu.memory_space<vmem>>, vector<4x324xf32>
    %c16_203 = arith.constant 16 : index
    %c0_204 = arith.constant 0 : index
    %177 = vector.load %arg10[%c16_203, %c0_204] : memref<72x324xf32, #tpu.memory_space<vmem>>, vector<4x324xf32>
    tpu.vector_store %arg10[%c16_203, %c0_204], %176 {strides = array<i32>} : memref<72x324xf32, #tpu.memory_space<vmem>>, vector<4x324xf32>,
    %c0_205 = arith.constant 0 : index
    %c0_206 = arith.constant 0 : index
    %c111_207 = arith.constant 111 : index
    %178 = vector.load %arg5[%c0_205, %c0_206, %c111_207] : memref<1x4x512xbf16, #tpu.memory_space<vmem>>, vector<1x4x324xbf16>
    %179 = vector.shape_cast %178 : vector<1x4x324xbf16> to vector<4x324xbf16>
    %180 = arith.extf %179 : vector<4x324xbf16> to vector<4x324xf32>
    %c20_208 = arith.constant 20 : index
    %c0_209 = arith.constant 0 : index
    %181 = vector.load %arg10[%c20_208, %c0_209] : memref<72x324xf32, #tpu.memory_space<vmem>>, vector<4x324xf32>
    tpu.vector_store %arg10[%c20_208, %c0_209], %180 {strides = array<i32>} : memref<72x324xf32, #tpu.memory_space<vmem>>, vector<4x324xf32>,
    %c0_210 = arith.constant 0 : index
    %c127_211 = arith.constant 127 : index
    %182 = vector.load %arg12[%c0_210, %c127_211] : memref<4x512xf32, #tpu.memory_space<vmem>>, vector<4x324xf32>
    %c24_212 = arith.constant 24 : index
    %c0_213 = arith.constant 0 : index
    %183 = vector.load %arg10[%c24_212, %c0_213] : memref<72x324xf32, #tpu.memory_space<vmem>>, vector<4x324xf32>
    tpu.vector_store %arg10[%c24_212, %c0_213], %182 {strides = array<i32>} : memref<72x324xf32, #tpu.memory_space<vmem>>, vector<4x324xf32>,
    %c0_214 = arith.constant 0 : index
    %c0_215 = arith.constant 0 : index
    %c127_216 = arith.constant 127 : index
    %184 = vector.load %arg5[%c0_214, %c0_215, %c127_216] : memref<1x4x512xbf16, #tpu.memory_space<vmem>>, vector<1x4x324xbf16>
    %185 = vector.shape_cast %184 : vector<1x4x324xbf16> to vector<4x324xbf16>
    %186 = arith.extf %185 : vector<4x324xbf16> to vector<4x324xf32>
    %c28_217 = arith.constant 28 : index
    %c0_218 = arith.constant 0 : index
    %187 = vector.load %arg10[%c28_217, %c0_218] : memref<72x324xf32, #tpu.memory_space<vmem>>, vector<4x324xf32>
    tpu.vector_store %arg10[%c28_217, %c0_218], %186 {strides = array<i32>} : memref<72x324xf32, #tpu.memory_space<vmem>>, vector<4x324xf32>,
    %c0_219 = arith.constant 0 : index
    %c128_220 = arith.constant 128 : index
    %188 = vector.load %arg12[%c0_219, %c128_220] : memref<4x512xf32, #tpu.memory_space<vmem>>, vector<4x324xf32>
    %c32_221 = arith.constant 32 : index
    %c0_222 = arith.constant 0 : index
    %189 = vector.load %arg10[%c32_221, %c0_222] : memref<72x324xf32, #tpu.memory_space<vmem>>, vector<4x324xf32>
    tpu.vector_store %arg10[%c32_221, %c0_222], %188 {strides = array<i32>} : memref<72x324xf32, #tpu.memory_space<vmem>>, vector<4x324xf32>,
    %c0_223 = arith.constant 0 : index
    %c0_224 = arith.constant 0 : index
    %c128_225 = arith.constant 128 : index
    %190 = vector.load %arg5[%c0_223, %c0_224, %c128_225] : memref<1x4x512xbf16, #tpu.memory_space<vmem>>, vector<1x4x324xbf16>
    %191 = vector.shape_cast %190 : vector<1x4x324xbf16> to vector<4x324xbf16>
    %192 = arith.extf %191 : vector<4x324xbf16> to vector<4x324xf32>
    %c36_226 = arith.constant 36 : index
    %c0_227 = arith.constant 0 : index
    %193 = vector.load %arg10[%c36_226, %c0_227] : memref<72x324xf32, #tpu.memory_space<vmem>>, vector<4x324xf32>
    tpu.vector_store %arg10[%c36_226, %c0_227], %192 {strides = array<i32>} : memref<72x324xf32, #tpu.memory_space<vmem>>, vector<4x324xf32>,
    %c0_228 = arith.constant 0 : index
    %c129_229 = arith.constant 129 : index
    %194 = vector.load %arg12[%c0_228, %c129_229] : memref<4x512xf32, #tpu.memory_space<vmem>>, vector<4x324xf32>
    %c40_230 = arith.constant 40 : index
    %c0_231 = arith.constant 0 : index
    %195 = vector.load %arg10[%c40_230, %c0_231] : memref<72x324xf32, #tpu.memory_space<vmem>>, vector<4x324xf32>
    tpu.vector_store %arg10[%c40_230, %c0_231], %194 {strides = array<i32>} : memref<72x324xf32, #tpu.memory_space<vmem>>, vector<4x324xf32>,
    %c0_232 = arith.constant 0 : index
    %c0_233 = arith.constant 0 : index
    %c129_234 = arith.constant 129 : index
    %196 = vector.load %arg5[%c0_232, %c0_233, %c129_234] : memref<1x4x512xbf16, #tpu.memory_space<vmem>>, vector<1x4x324xbf16>
    %197 = vector.shape_cast %196 : vector<1x4x324xbf16> to vector<4x324xbf16>
    %198 = arith.extf %197 : vector<4x324xbf16> to vector<4x324xf32>
    %c44_235 = arith.constant 44 : index
    %c0_236 = arith.constant 0 : index
    %199 = vector.load %arg10[%c44_235, %c0_236] : memref<72x324xf32, #tpu.memory_space<vmem>>, vector<4x324xf32>
    tpu.vector_store %arg10[%c44_235, %c0_236], %198 {strides = array<i32>} : memref<72x324xf32, #tpu.memory_space<vmem>>, vector<4x324xf32>,
    %c0_237 = arith.constant 0 : index
    %c145_238 = arith.constant 145 : index
    %200 = vector.load %arg12[%c0_237, %c145_238] : memref<4x512xf32, #tpu.memory_space<vmem>>, vector<4x324xf32>
    %c48_239 = arith.constant 48 : index
    %c0_240 = arith.constant 0 : index
    %201 = vector.load %arg10[%c48_239, %c0_240] : memref<72x324xf32, #tpu.memory_space<vmem>>, vector<4x324xf32>
    tpu.vector_store %arg10[%c48_239, %c0_240], %200 {strides = array<i32>} : memref<72x324xf32, #tpu.memory_space<vmem>>, vector<4x324xf32>,
    %c0_241 = arith.constant 0 : index
    %c0_242 = arith.constant 0 : index
    %c145_243 = arith.constant 145 : index
    %202 = vector.load %arg5[%c0_241, %c0_242, %c145_243] : memref<1x4x512xbf16, #tpu.memory_space<vmem>>, vector<1x4x324xbf16>
    %203 = vector.shape_cast %202 : vector<1x4x324xbf16> to vector<4x324xbf16>
    %204 = arith.extf %203 : vector<4x324xbf16> to vector<4x324xf32>
    %c52_244 = arith.constant 52 : index
    %c0_245 = arith.constant 0 : index
    %205 = vector.load %arg10[%c52_244, %c0_245] : memref<72x324xf32, #tpu.memory_space<vmem>>, vector<4x324xf32>
    tpu.vector_store %arg10[%c52_244, %c0_245], %204 {strides = array<i32>} : memref<72x324xf32, #tpu.memory_space<vmem>>, vector<4x324xf32>,
    %c0_246 = arith.constant 0 : index
    %c146_247 = arith.constant 146 : index
    %206 = vector.load %arg12[%c0_246, %c146_247] : memref<4x512xf32, #tpu.memory_space<vmem>>, vector<4x324xf32>
    %c56_248 = arith.constant 56 : index
    %c0_249 = arith.constant 0 : index
    %207 = vector.load %arg10[%c56_248, %c0_249] : memref<72x324xf32, #tpu.memory_space<vmem>>, vector<4x324xf32>
    tpu.vector_store %arg10[%c56_248, %c0_249], %206 {strides = array<i32>} : memref<72x324xf32, #tpu.memory_space<vmem>>, vector<4x324xf32>,
    %c0_250 = arith.constant 0 : index
    %c0_251 = arith.constant 0 : index
    %c146_252 = arith.constant 146 : index
    %208 = vector.load %arg5[%c0_250, %c0_251, %c146_252] : memref<1x4x512xbf16, #tpu.memory_space<vmem>>, vector<1x4x324xbf16>
    %209 = vector.shape_cast %208 : vector<1x4x324xbf16> to vector<4x324xbf16>
    %210 = arith.extf %209 : vector<4x324xbf16> to vector<4x324xf32>
    %c60_253 = arith.constant 60 : index
    %c0_254 = arith.constant 0 : index
    %211 = vector.load %arg10[%c60_253, %c0_254] : memref<72x324xf32, #tpu.memory_space<vmem>>, vector<4x324xf32>
    tpu.vector_store %arg10[%c60_253, %c0_254], %210 {strides = array<i32>} : memref<72x324xf32, #tpu.memory_space<vmem>>, vector<4x324xf32>,
    %c0_255 = arith.constant 0 : index
    %c147_256 = arith.constant 147 : index
    %212 = vector.load %arg12[%c0_255, %c147_256] : memref<4x512xf32, #tpu.memory_space<vmem>>, vector<4x324xf32>
    %c64_257 = arith.constant 64 : index
    %c0_258 = arith.constant 0 : index
    %213 = vector.load %arg10[%c64_257, %c0_258] : memref<72x324xf32, #tpu.memory_space<vmem>>, vector<4x324xf32>
    tpu.vector_store %arg10[%c64_257, %c0_258], %212 {strides = array<i32>} : memref<72x324xf32, #tpu.memory_space<vmem>>, vector<4x324xf32>,
    %c0_259 = arith.constant 0 : index
    %c0_260 = arith.constant 0 : index
    %c147_261 = arith.constant 147 : index
    %214 = vector.load %arg5[%c0_259, %c0_260, %c147_261] : memref<1x4x512xbf16, #tpu.memory_space<vmem>>, vector<1x4x324xbf16>
    %215 = vector.shape_cast %214 : vector<1x4x324xbf16> to vector<4x324xbf16>
    %216 = arith.extf %215 : vector<4x324xbf16> to vector<4x324xf32>
    %c68_262 = arith.constant 68 : index
    %c0_263 = arith.constant 0 : index
    %217 = vector.load %arg10[%c68_262, %c0_263] : memref<72x324xf32, #tpu.memory_space<vmem>>, vector<4x324xf32>
    tpu.vector_store %arg10[%c68_262, %c0_263], %216 {strides = array<i32>} : memref<72x324xf32, #tpu.memory_space<vmem>>, vector<4x324xf32>,
    %c2 = arith.constant 2 : index
    %c0_264 = arith.constant 0 : index
    %c0_265 = arith.constant 0 : index
    %218 = vector.load %arg6[%c2, %c0_264, %c0_265] : memref<3x4x72xf32, #tpu.memory_space<vmem>>, vector<1x4x72xf32>
    %219 = vector.shape_cast %218 : vector<1x4x72xf32> to vector<4x72xf32>
    %c0_266 = arith.constant 0 : index
    %c0_267 = arith.constant 0 : index
    %220 = vector.load %arg10[%c0_266, %c0_267] : memref<72x324xf32, #tpu.memory_space<vmem>>, vector<72x324xf32>
    %cst_268 = arith.constant dense<0.000000e+00> : vector<4x324xf32>
    %221 = tpu.matmul %219, %220, %cst_268 {dimension_numbers = #tpu.dot_dimension_numbers<[1], [0], [0], [1], [0, 0, 1, 1], [], []>} : vector<4x72xf32>, vector<72x324xf32>, vector<4x324xf32> -> vector<4x324xf32>
    %c2_269 = arith.constant 2 : index
    %c0_270 = arith.constant 0 : index
    %c0_271 = arith.constant 0 : index
    %222 = vector.load %arg7[%c2_269, %c0_270, %c0_271] : memref<3x4x1xf32, #tpu.memory_space<vmem>>, vector<1x4x1xf32>
    %223 = vector.shape_cast %222 : vector<1x4x1xf32> to vector<4x1xf32>
    %224 = vector.broadcast %223 : vector<4x1xf32> to vector<4x324xf32>
    %225 = arith.addf %221, %224 : vector<4x324xf32>
    %cst_272 = arith.constant 0.000000e+00 : f32
    %226 = vector.broadcast %cst_272 : f32 to vector<4x324xf32>
    %227 = arith.maximumf %225, %226 : vector<4x324xf32>
    %228 = vector.broadcast %1 : vector<1x324xf32> to vector<4x324xf32>
    %229 = arith.mulf %228, %227 : vector<4x324xf32>
    %c0_273 = arith.constant 0 : index
    %c0_274 = arith.constant 0 : index
    %230 = vector.load %arg8[%c0_273, %c0_274] : memref<5x6xf32, #tpu.memory_space<vmem>>, vector<5x4xf32>
    %cst_275 = arith.constant dense<0.000000e+00> : vector<5x324xf32>
    %231 = tpu.matmul %230, %229, %cst_275 {dimension_numbers = #tpu.dot_dimension_numbers<[1], [0], [0], [1], [0, 0, 1, 1], [], []>} : vector<5x4xf32>, vector<4x324xf32>, vector<5x324xf32> -> vector<5x324xf32>
    %232 = vector.broadcast %3 : vector<1x324xf32> to vector<5x324xf32>
    %233 = arith.mulf %231, %232 : vector<5x324xf32>
    %cst_276 = arith.constant dense<0.000000e+00> : vector<5xf32>
    %234 = vector.multi_reduction <add>, %233, %cst_276 [1] : vector<5x324xf32> to vector<5xf32>
    %235 = vector.shape_cast %234 : vector<5xf32> to vector<5x1xf32>
    %cst_277 = arith.constant 3.906250e-03 : f32
    %236 = vector.broadcast %cst_277 : f32 to vector<5x1xf32>
    %237 = arith.mulf %235, %236 : vector<5x1xf32>
    %cst_278 = arith.constant dense<0.000000e+00> : vector<1xf32>
    %238 = vector.multi_reduction <add>, %3, %cst_278 [1] : vector<1x324xf32> to vector<1xf32>
    %239 = vector.shape_cast %238 : vector<1xf32> to vector<1x1xf32>
    %cst_279 = arith.constant 3.906250e-03 : f32
    %240 = vector.broadcast %cst_279 : f32 to vector<1x1xf32>
    %241 = arith.mulf %239, %240 : vector<1x1xf32>
    %c0_280 = arith.constant 0 : index
    %c4_281 = arith.constant 4 : index
    %242 = vector.load %arg8[%c0_280, %c4_281] : memref<5x6xf32, #tpu.memory_space<vmem>>, vector<5x1xf32>
    %243 = vector.broadcast %241 : vector<1x1xf32> to vector<5x1xf32>
    %244 = arith.mulf %243, %242 : vector<5x1xf32>
    %245 = arith.addf %237, %244 : vector<5x1xf32>
    %c0_282 = arith.constant 0 : index
    %c5 = arith.constant 5 : index
    %246 = vector.load %arg8[%c0_282, %c5] : memref<5x6xf32, #tpu.memory_space<vmem>>, vector<5x1xf32>
    %247 = arith.addf %245, %246 : vector<5x1xf32>
    %cst_283 = arith.constant dense<0xFF800000> : vector<1xf32>
    %248 = vector.multi_reduction <maximumf>, %247, %cst_283 [0] : vector<5x1xf32> to vector<1xf32>
    %249 = vector.shape_cast %248 : vector<1xf32> to vector<1x1xf32>
    %250 = vector.broadcast %249 : vector<1x1xf32> to vector<5x1xf32>
    %251 = arith.subf %247, %250 : vector<5x1xf32>
    %252 = math.exp %251 : vector<5x1xf32>
    %cst_284 = arith.constant dense<0.000000e+00> : vector<1xf32>
    %253 = vector.multi_reduction <add>, %252, %cst_284 [0] : vector<5x1xf32> to vector<1xf32>
    %254 = vector.shape_cast %253 : vector<1xf32> to vector<1x1xf32>
    %255 = vector.broadcast %254 : vector<1x1xf32> to vector<5x1xf32>
    %256 = arith.divf %252, %255 : vector<5x1xf32>
    %c0_285 = arith.constant 0 : index
    %c0_286 = arith.constant 0 : index
    %c0_287 = arith.constant 0 : index
    %257 = vector.load %arg9[%c0_285, %c0_286, %c0_287] : memref<1x5x1xf32, #tpu.memory_space<vmem>>, vector<1x5x1xf32>
    %258 = vector.shape_cast %257 : vector<1x5x1xf32> to vector<5x1xf32>
    %259 = vector.shape_cast %256 : vector<5x1xf32> to vector<1x5x1xf32>
    tpu.vector_store %arg9[%c0_285, %c0_286, %c0_287], %259 {strides = array<i32>} : memref<1x5x1xf32, #tpu.memory_space<vmem>>, vector<1x5x1xf32>,
    return
  }
  func.func @transform_0(%arg0: i32) -> (i32, i32, i32) {
    %c0_i32 = arith.constant 0 : i32
    %c0_i32_0 = arith.constant 0 : i32
    %c0_i32_1 = arith.constant 0 : i32
    return %arg0, %c0_i32, %c0_i32_0 : i32, i32, i32
  }
  func.func @transform_1(%arg0: i32) -> (i32, i32, i32) {
    %c0_i32 = arith.constant 0 : i32
    %c0_i32_0 = arith.constant 0 : i32
    %c0_i32_1 = arith.constant 0 : i32
    return %arg0, %c0_i32, %c0_i32_0 : i32, i32, i32
  }
  func.func @transform_2(%arg0: i32) -> (i32, i32, i32) {
    %c0_i32 = arith.constant 0 : i32
    %c0_i32_0 = arith.constant 0 : i32
    %c0_i32_1 = arith.constant 0 : i32
    return %arg0, %c0_i32, %c0_i32_0 : i32, i32, i32
  }
  func.func @transform_3(%arg0: i32) -> (i32, i32, i32) {
    %c0_i32 = arith.constant 0 : i32
    %c0_i32_0 = arith.constant 0 : i32
    %c0_i32_1 = arith.constant 0 : i32
    return %arg0, %c0_i32, %c0_i32_0 : i32, i32, i32
  }
  func.func @transform_4(%arg0: i32) -> (i32, i32, i32) {
    %c0_i32 = arith.constant 0 : i32
    %c0_i32_0 = arith.constant 0 : i32
    %c0_i32_1 = arith.constant 0 : i32
    return %arg0, %c0_i32, %c0_i32_0 : i32, i32, i32
  }
  func.func @transform_5(%arg0: i32) -> (i32, i32, i32) {
    %c0_i32 = arith.constant 0 : i32
    %c0_i32_0 = arith.constant 0 : i32
    %c0_i32_1 = arith.constant 0 : i32
    %c0_i32_2 = arith.constant 0 : i32
    return %c0_i32, %c0_i32_0, %c0_i32_1 : i32, i32, i32
  }
  func.func @transform_6(%arg0: i32) -> (i32, i32, i32) {
    %c0_i32 = arith.constant 0 : i32
    %c0_i32_0 = arith.constant 0 : i32
    %c0_i32_1 = arith.constant 0 : i32
    %c0_i32_2 = arith.constant 0 : i32
    return %c0_i32, %c0_i32_0, %c0_i32_1 : i32, i32, i32
  }
  func.func @transform_7(%arg0: i32) -> (i32, i32) {
    %c0_i32 = arith.constant 0 : i32
    %c0_i32_0 = arith.constant 0 : i32
    %c0_i32_1 = arith.constant 0 : i32
    return %c0_i32, %c0_i32_0 : i32, i32
  }
  func.func @transform_8(%arg0: i32) -> (i32, i32, i32) {
    %c0_i32 = arith.constant 0 : i32
    %c0_i32_0 = arith.constant 0 : i32
    %c0_i32_1 = arith.constant 0 : i32
    return %arg0, %c0_i32, %c0_i32_0 : i32, i32, i32
  }
}

</mosaic_0001>

<bundles_post_ra>
// kernel: simple_decoder_forward.1
= control target key start
LH: loop header
LB: loop body
LE: loop exit
PB: predicated region body
PF: predicated region fallthrough
CT: control target
= control target key end

     0   :  { %s3013_s27 = smov 0   ;;  %s3593_s0 = inlined_call_operand.vmem [shape: f32[2,2,324], index: 0, kind: input, shape index: {}]   ;;  %s3594_s1 = inlined_call_operand.vmem [shape: bf16[2,4,512], index: 1, kind: input, shape index: {}]   ;;  %s3595_s2 = inlined_call_operand.vmem [shape: bf16[2,4,512], index: 2, kind: input, shape index: {}]   ;;  %s3596_s3 = inlined_call_operand.vmem [shape: bf16[2,4,512], index: 3, kind: input, shape index: {}]   ;;  %s3597_s4 = inlined_call_operand.vmem [shape: bf16[2,4,512], index: 4, kind: input, shape index: {}]   ;;  %s3598_s5 = inlined_call_operand.vmem [shape: f32[3,4,72], index: 5, kind: input, shape index: {}]   ;;  %s3599_s6 = inlined_call_operand.vmem [shape: f32[3,4,1], index: 6, kind: input, shape index: {}]   ;;  %s3600_s7 = inlined_call_operand.vmem [shape: f32[5,6], index: 7, kind: input, shape index: {}]   ;;  %s3601_s8 = inlined_call_operand.vmem [shape: f32[2,5,1], index: 8, kind: output, shape index: {}]  }
   0x1 LB: > { %s2432_s28 = sadd.s32 4294967295, %s2953_s27   ;;  %p2436_p0 = scmp.ge.s32.totalorder %s2953_s27, 1  ;;  %s2953_s27 = sphi %s3013_s27, %s18_s27  }
   0x2   : > { %p302_p1 = scmp.lt.s32.totalorder %s2953_s27, 3 }
   0x4   : > { %p303_p2 = pnand %p2436_p0, %p302_p1 }
   0x5   : > { %p355_p3 = scmp.lt.s32.totalorder (!%p303_p2), %s2432_s28, 1  ;;  %s2955_s14 = smov (!%p303_p2), 18   ;;  %vm411_vm0 = vcmask (!%p303_p2), 551936   ;;  %vm436_vm1 = vcmask (!%p303_p2), 556036   ;;  %v2959_v33 = vmov (!%p303_p2), 0.0|0.0   ;;  %vm2965_vm2 = vmmov (!%p303_p2), 0  }
   0x6   : > { %306 = sbr.rel (%p303_p2) target bundleno = 1780 (0x6f4), region = 52  ;;  %s2956_s15 = smov (!%p303_p2), 19   ;;  %2585 = vmatprep.subr.bf16.mxu1 (!%p303_p2), %v2959_v33  ;;  %vm453_vm3 = vcmask (!%p303_p2), 146432   ;;  %vm402_vm4 = vcmask (!%p303_p2), 154624   ;;  %vm502_vm5 = vcmask (!%p303_p2), 138240   ;;  %vm551_vm6 = vcmask (!%p303_p2), 7168  }
   0x7   : > { %s2957_s16 = smov (!%p303_p2), 17   ;;  %s2958_s17 = smov (!%p303_p2), 1   ;;  %vm618_vm7 = vcmask (!%p303_p2), 1039360   ;;  %vm660_vm8 = vcmask (!%p303_p2), 908288   ;;  %vm702_vm9 = vcmask (!%p303_p2), 900096   ;;  %vm744_vm10 = vcmask (!%p303_p2), 891904  }
   0x8   : > { %s2960_s18 = smov (!%p303_p2), 127   ;;  %s2961_s22 = smov (!%p303_p2), 111   ;;  %vm808_vm11 = vcmask (!%p303_p2), 588800   ;;  %vm976_vm12 = vcmask (!%p303_p2), 1044000   ;;  %vm2105_vm13 = vcmask (!%p303_p2), 1043456   ;;  %vm2101_vm14 = vcmask (!%p303_p2), 31744  }
   0x9   : > { %s2962_s23 = smov (!%p303_p2), 110   ;;  %s2963_s24 = smov (!%p303_p2), 109   ;;  %vm2285_vm15 = vcmask (!%p303_p2), 1040384  }
   0xd   : > { %s3603_s28 = smov (!%p355_p3, %s2432_s28), 1 }
   0xe   : > { %s3024_s29 = sshll.u32 %s3603_s28, 3 }
   0xf   : > { %s3030_s10 = scalar_lea.vmem %s3594_s1, %s3024_s29  ;;  %s3036_s13 = scalar_lea.vmem %s3595_s2, %s3024_s29 }
  0x10   : > { %v438_v0 = vld [vmem:[%s3030_s10] sm:$0xff]  ;;  %s3074_s21 = scalar_lea.vmem %s3596_s3, %s3024_s29  ;;  %s3343_s20 = scalar_lea.vmem %s3597_s4, %s3024_s29 }
  0x11   : > { %v463_v1 = vld [vmem:[%s3036_s13] sm:$0xff]  ;;  %v439_v2 = vunpack.c.l.bf16 %v438_v0  ;;  %v440_v3 = vunpack.c.h.bf16 %v438_v0 }
  0x12   : > { %v465_v4 = vunpack.c.h.bf16 %v463_v1  ;;  %v464_v6 = vunpack.c.l.bf16 %v463_v1  ;;  %v585_v12 = vld [vmem:[%s3030_s10 + $0x2] sm:$0x3f] }
  0x13   : > { %v443_v5 = vcombine.high %v439_v2, %v439_v2  ;;  %v627_v13 = vld [vmem:[%s3036_s13 + $0x2] sm:$0x3f]  ;;  %v586_v18 = vunpack.c.l.bf16 %v585_v12  ;;  %v444_v19 = vcombine.high %v440_v3, %v440_v3  ;;  %v587_v21 = vunpack.c.h.bf16 %v585_v12 }
  0x14   : > { %v469_v7 = vcombine.low %v465_v4, %v465_v4  ;;  %v468_v10 = vcombine.low %v464_v6, %v464_v6  ;;  %v606_v14 = vld [vmem:[%s3030_s10 + $0x2] sm:$0x3f]  ;;  %v629_v17 = vunpack.c.h.bf16 %v627_v13  ;;  %v628_v25 = vunpack.c.l.bf16 %v627_v13 }
  0x15   : > { %v2685_v8 = vpack.i.bf16 %v440_v3, %v443_v5  ;;  %v594_v15 = vld [vmem:[%s3036_s13 + $0x2] sm:$0x3f]  ;;  %v607_v20 = vunpack.c.l.bf16 %v606_v14  ;;  %v589_v23 = vcombine.high %v586_v18, %v586_v18  ;;  %591 = vst [vmem:[#allocation2 + $0x60] sm:$0xf] %v586_v18  ;;  %593 = vst.msk [vmem:[#allocation2 + $0x70] sm:$0xf] %vm411_vm0, %v587_v21  ;;  %v2740_v27 = vpack.i.bf16 %v465_v4, %v444_v19 }
  0x16   : > { %v2690_v9 = vpack.i.bf16 %v469_v7, %v464_v6  ;;  %v2700_v11 = vpack.i.bf16 %v468_v10, %v439_v2  ;;  %v596_v16 = vunpack.c.h.bf16 %v594_v15  ;;  %v595_v24 = vunpack.c.l.bf16 %v594_v15  ;;  %v648_v31 = vld [vmem:[%s3030_s10 + $0x2] sm:$0x3f] }
  0x17   : > { %2686 = vrot.lane.b32.xlu1 %v2685_v8, %s2955_s14  ;;  %2676 = vrot.lane.b32.xlu0 %v2685_v8, %s2956_s15  ;;  %592 = vst [vmem:[#allocation2 + $0x68] sm:$0xf] %v589_v23  ;;  %v633_v26 = vcombine.low %v629_v17, %v629_v17  ;;  %v608_v28 = vunpack.c.h.bf16 %v606_v14  ;;  %v611_v29 = vcombine.high %v607_v20, %v607_v20  ;;  %v649_v36 = vunpack.c.l.bf16 %v648_v31  ;;  %v690_v37 = vld [vmem:[%s3030_s10 + $0x2] sm:$0x3f] }
  0x18   : > { %v600_v22 = vcombine.low %v596_v16, %v596_v16  ;;  %604 = vst [vmem:[#allocation2 + $0x68] sm:$0xf0] %v595_v24  ;;  %v599_v30 = vcombine.low %v595_v24, %v595_v24  ;;  %v632_v32 = vcombine.low %v628_v25, %v628_v25  ;;  %v669_v38 = vld [vmem:[%s3036_s13 + $0x2] sm:$0x3f]  ;;  %v650_v40 = vunpack.c.h.bf16 %v648_v31 }
  0x19   : > { %v2750_v34 = vpack.i.bf16 %v633_v26, %v628_v25  ;;  %v2745_v35 = vpack.i.bf16 %v608_v28, %v611_v29  ;;  %v653_v41 = vcombine.high %v649_v36, %v649_v36  ;;  %v691_v42 = vunpack.c.l.bf16 %v690_v37  ;;  %v711_v44 = vld [vmem:[%s3036_s13 + $0x2] sm:$0x3f] }
  0x1a   : > { %605 = vst.msk [vmem:[#allocation2 + $0x70] sm:$0xf0] %vm436_vm1, %v600_v22  ;;  %603 = vst [vmem:[#allocation2 + $0x60] sm:$0xf0] %v599_v30  ;;  %v2755_v39 = vpack.i.bf16 %v632_v32, %v607_v20  ;;  %v671_v43 = vunpack.c.h.bf16 %v669_v38  ;;  %v692_v45 = vunpack.c.h.bf16 %v690_v37  ;;  %v670_v46 = vunpack.c.l.bf16 %v669_v38  ;;  %v732_v51 = vld [vmem:[%s3030_s10 + $0x2] sm:$0x3f] }
  0x1b   : > { %2691 = vrot.lane.b32.xlu1 %v2690_v9, %s2955_s14  ;;  %2681 = vrot.lane.b32.xlu0 %v2690_v9, %s2956_s15  ;;  %v2770_v47 = vpack.i.bf16 %v650_v40, %v653_v41  ;;  %v695_v48 = vcombine.high %v691_v42, %v691_v42  ;;  %v713_v50 = vunpack.c.h.bf16 %v711_v44  ;;  %v712_v53 = vunpack.c.l.bf16 %v711_v44  ;;  %v1180_v55 = vld [vmem:[%s3074_s21 + $0x2] sm:$0x3f]  ;;  %s2653_s10 = smul.u32 6, %s3603_s28 }
  0x1c   : > { %v675_v49 = vcombine.low %v671_v43, %v671_v43  ;;  %v674_v52 = vcombine.low %v670_v46, %v670_v46  ;;  %v733_v54 = vunpack.c.l.bf16 %v732_v51  ;;  %v1181_v59 = vunpack.c.l.bf16 %v1180_v55  ;;  %v753_v60 = vld [vmem:[%s3036_s13 + $0x2] sm:$0x3f] }
  0x1d   : > { %v2780_v56 = vpack.i.bf16 %v692_v45, %v695_v48  ;;  %v717_v58 = vcombine.low %v713_v50, %v713_v50  ;;  %v734_v63 = vunpack.c.h.bf16 %v732_v51  ;;  %v716_v1 = vcombine.low %v712_v53, %v712_v53  ;;  %v802_v17 = vld [vmem:[%s3599_s6] sm:$0xf]  ;;  %s3288_s13 = scalar_lea.vmem %s3593_s0, %s2653_s10  ;;  %s383_s10 = scalar_lea.vmem %s3601_s8, %s3024_s29 }
  0x1e   : > { %v2775_v57 = vpack.i.bf16 %v675_v49, %v670_v46  ;;  %v1185_v62 = vcombine.low %v1181_v59, %v1181_v59  ;;  %v737_v0 = vcombine.high %v733_v54, %v733_v54  ;;  %v2790_v3 = vpack.i.bf16 %v674_v52, %v649_v36  ;;  %v1054_v18 = vld [vmem:[%s3074_s21] sm:$0xff] }
  0x1f   : > { %2701 = vrot.lane.b32.xlu1 %v2700_v11, %s2955_s14  ;;  %2696 = vrot.lane.b32.xlu0 %v2700_v11, %s2956_s15  ;;  %v3080_v61 = vld [vmem:[#allocation2 + $0x68] sm:$0xff]  ;;  %v2785_v4 = vpack.i.bf16 %v717_v58, %v712_v53  ;;  %v754_v5 = vunpack.c.l.bf16 %v753_v60  ;;  %v755_v6 = vunpack.c.h.bf16 %v753_v60  ;;  %v1182_v7 = vunpack.c.h.bf16 %v1180_v55  ;;  %v1211_v19 = vld [vmem:[%s3074_s21 + $0x2] sm:$0x3f] }
  0x20   : > { %1190 = vst [vmem:[#allocation2 + $0x68] sm:$0xf0] %v1181_v59  ;;  %v2964_v16 = vmov 0.0   ;;  %v2966_v20 = vmov 0   ;;  %v1055_v21 = vunpack.c.l.bf16 %v1054_v18  ;;  %v1056_v22 = vunpack.c.h.bf16 %v1054_v18 }
  0x21   : > { %v3082_v2 = vld [vmem:[#allocation2 + $0x60] sm:$0xff]  ;;  %v758_v10 = vcombine.low %v754_v5, %v754_v5  ;;  %v1186_v12 = vcombine.low %v1182_v7, %v1182_v7  ;;  %v3088_v13 = vld [vmem:[#allocation2 + $0x70] sm:$0xff]  ;;  %975 = vst [vmem:[#allocation3] sm:$0xf] %v2964_v16  ;;  %1538 = vst [vmem:[#allocation4] sm:$0xf] %v2964_v16  ;;  %2519 = vmatprep.mubr.msk.f32.mxu1 %vm2965_vm2, %v2964_v16  ;;  %876 = vmatprep.mubr.f32.mxu0 %v2964_v16  ;;  %v1213_v25 = vunpack.c.h.bf16 %v1211_v19 }
  0x22   : > { %1189 = vst [vmem:[#allocation2 + $0x60] sm:$0xf0] %v1185_v62  ;;  %2815 = vset.pattern.permute.xlu0 %v2966_v20  ;;  %2936 = vset.pattern.permute.xlu1 %v2966_v20  ;;  %v1060_v23 = vcombine.low %v1056_v22, %v1056_v22  ;;  %v1012_v24 = vcombine.low %v1055_v21, %v1055_v21  ;;  %v1212_v28 = vunpack.c.l.bf16 %v1211_v19  ;;  %977 = vst.msk [vmem:[#allocation3 + $0xc] sm:$0xf] %vm976_vm12, %v2964_v16 }
  0x23   : > { %2711 = vrot.lane.b32.xlu1 %v2690_v9, %s2957_s16  ;;  %2706 = vrot.lane.b32.xlu0 %v2685_v8, %s2957_s16  ;;  %1191 = vst.msk [vmem:[#allocation2 + $0x70] sm:$0xf0] %vm436_vm1, %v1186_v12  ;;  %v2810_v14 = vpack.i.bf16 %v758_v10, %v733_v54  ;;  %v1217_v29 = vcombine.low %v1213_v25, %v1213_v25 }
  0x24   : > { %v2821_v26 = vpack.i.bf16 %v1060_v23, %v1055_v21  ;;  %v1216_v31 = vcombine.low %v1212_v28, %v1212_v28  ;;  %1539 = vst.msk [vmem:[#allocation4 + $0xc] sm:$0xf] %vm976_vm12, %v2964_v16 }
  0x25   : > { %v2856_v30 = vpack.i.bf16 %v1217_v29, %v1212_v28 }
  0x27   : > { %2721 = vrot.lane.b32.xlu1 %v2690_v9, %s2958_s17  ;;  %2716 = vrot.lane.b32.xlu0 %v2685_v8, %s2958_s17  ;;  %v2800_v8 = vpack.i.bf16 %v734_v63, %v737_v0  ;;  %v2795_v9 = vpack.i.bf16 %v716_v1, %v691_v42 }
  0x2b   : > { %2731 = vrot.lane.b32.xlu1 %v2700_v11, %s2958_s17  ;;  %2726 = vrot.lane.b32.xlu0 %v2700_v11, %s2957_s16  ;;  %v759_v11 = vcombine.low %v755_v6, %v755_v6 }
  0x2d   : > { %v2805_v15 = vpack.i.bf16 %v759_v11, %v754_v5 }
  0x2f   : > { %2741 = vrot.lane.b32.xlu1 %v2740_v27, %s2955_s14  ;;  %2736 = vrot.lane.b32.xlu0 %v2740_v27, %s2956_s15 }
  0x33   : > { %2751 = vrot.lane.b32.xlu1 %v2750_v34, %s2960_s18  ;;  %2746 = vrot.lane.b32.xlu0 %v2745_v35, %s2960_s18 }
  0x37   : > { %2761 = vrot.lane.b32.xlu1 %v2740_v27, %s2957_s16  ;;  %2756 = vrot.lane.b32.xlu0 %v2755_v39, %s2960_s18 }
  0x3b   : > { %2771 = vrot.lane.b32.xlu1 %v2770_v47, %s2961_s22  ;;  %2766 = vrot.lane.b32.xlu0 %v2740_v27, %s2958_s17  ;;  %v2826_v27 = vpack.i.bf16 %v1056_v22, %v1012_v24 }
  0x3f   : > { %2781 = vrot.lane.b32.xlu1 %v2780_v56, %s2962_s23  ;;  %2776 = vrot.lane.b32.xlu0 %v2775_v57, %s2961_s22 }
  0x43   : > { %2791 = vrot.lane.b32.xlu1 %v2790_v3, %s2961_s22  ;;  %2786 = vrot.lane.b32.xlu0 %v2785_v4, %s2962_s23 }
  0x47   : > { %2801 = vrot.lane.b32.xlu1 %v2800_v8, %s2963_s24  ;;  %2796 = vrot.lane.b32.xlu0 %v2795_v9, %s2962_s23 }
  0x4b   : > { %2811 = vrot.lane.b32.xlu1 %v2810_v14, %s2963_s24  ;;  %2806 = vrot.lane.b32.xlu0 %v2805_v15, %s2963_s24 }
  0x4f   : > { %805 = vperm.xlu0 %2815, %v802_v17   ;;  %2822 = vrot.lane.b32.xlu1 %v2821_v26, %s2955_s14 }
  0x53   : > { %2817 = vrot.lane.b32.xlu0 %v2821_v26, %s2956_s15  ;;  %2827 = vrot.lane.b32.xlu1 %v2826_v27, %s2956_s15 }
  0x57   : > { %2837 = vrot.lane.b32.xlu0 %v2821_v26, %s2957_s16  ;;  %2832 = vrot.lane.b32.xlu1 %v2826_v27, %s2955_s14 }
  0x5b   : > { %2857 = vrot.lane.b32.xlu0 %v2856_v30, %s2960_s18  ;;  %2842 = vrot.lane.b32.xlu1 %v2821_v26, %s2958_s17 }
  0x5f   : > { %1218 = vrot.lane.b32.xlu0 %v1216_v31, %s2960_s18  ;;  %2847 = vrot.lane.b32.xlu1 %v2826_v27, %s2957_s16 }
  0x63   : > { %2852 = vrot.lane.b32.xlu1 %v2826_v27, %s2958_s17 }
  0x89   : > { %v3115_v32 = vpop.permute.xlu1 %2686  ;;  %v3117_v34 = vpop.permute.xlu0 %2676 }
  0x8a   : > { %v2689_v35 = vunpack.i.h.bf16 %v3115_v32  ;;  %v2688_v36 = vunpack.i.l.bf16 %v3115_v32  ;;  %v2679_v37 = vunpack.i.h.bf16 %v3117_v34  ;;  %v2678_v38 = vunpack.i.l.bf16 %v3117_v34 }
  0x8c   : > { %v455_v39 = vsel %vm453_vm3, %v2688_v36, %v2689_v35  ;;  %v404_v40 = vsel %vm402_vm4, %v2678_v38, %v2679_v37 }
  0x8d   : > { %461 = vst [vmem:[#allocation2 + $0x20] sm:$0xf] %v455_v39  ;;  %410 = vst [vmem:[#allocation2 + $0x8] sm:$0xf] %v404_v40  ;;  %v3129_v41 = vpop.permute.xlu1 %2691  ;;  %v3131_v42 = vpop.permute.xlu0 %2681 }
  0x8e   : > { %v2694_v43 = vunpack.i.h.bf16 %v3129_v41  ;;  %v2693_v44 = vunpack.i.l.bf16 %v3129_v41  ;;  %v2684_v45 = vunpack.i.h.bf16 %v3131_v42  ;;  %v2683_v46 = vunpack.i.l.bf16 %v3131_v42 }
  0x90   : > { %v479_v47 = vsel %vm453_vm3, %v2693_v44, %v2694_v43  ;;  %v429_v48 = vsel %vm402_vm4, %v2683_v46, %v2684_v45 }
  0x91   : > { %485 = vst [vmem:[#allocation2 + $0x20] sm:$0xf0] %v479_v47  ;;  %435 = vst [vmem:[#allocation2 + $0x8] sm:$0xf0] %v429_v48  ;;  %v2702_v49 = vpop.permute.xlu1 %2701  ;;  %v2697_v50 = vpop.permute.xlu0 %2696 }
  0x92   : > { %v2704_v51 = vunpack.i.h.bf16 %v2702_v49  ;;  %v2703_v52 = vunpack.i.l.bf16 %v2702_v49  ;;  %v2699_v53 = vunpack.i.h.bf16 %v2697_v50  ;;  %v2698_v54 = vunpack.i.l.bf16 %v2697_v50 }
  0x94   : > { %v454_v55 = vsel %vm453_vm3, %v2703_v52, %v2688_v36  ;;  %v478_v56 = vsel %vm453_vm3, %v2704_v51, %v2693_v44  ;;  %v403_v57 = vsel %vm402_vm4, %v2698_v54, %v2678_v38  ;;  %v428_v58 = vsel %vm402_vm4, %v2699_v53, %v2683_v46 }
  0x95   : > { %460 = vst [vmem:[#allocation2 + $0x18] sm:$0xf] %v454_v55  ;;  %484 = vst [vmem:[#allocation2 + $0x18] sm:$0xf0] %v478_v56  ;;  %v3147_v59 = vpop.permute.xlu1 %2711  ;;  %v3149_v60 = vpop.permute.xlu0 %2706 }
  0x96   : > { %409 = vst [vmem:[#allocation2] sm:$0xf] %v403_v57  ;;  %434 = vst [vmem:[#allocation2] sm:$0xf0] %v428_v58  ;;  %v2714_v62 = vunpack.i.h.bf16 %v3147_v59  ;;  %v2713_v63 = vunpack.i.l.bf16 %v3147_v59  ;;  %v2709_v0 = vunpack.i.h.bf16 %v3149_v60  ;;  %v2708_v1 = vunpack.i.l.bf16 %v3149_v60 }
  0x98   : > { %v528_v3 = vsel %vm502_vm5, %v2713_v63, %v2714_v62  ;;  %v504_v4 = vsel %vm502_vm5, %v2708_v1, %v2709_v0  ;;  %v776_v5 = vld [vmem:[#allocation2 + $0x8] sm:$0xff]  ;;  %v779_v6 = vld [vmem:[#allocation2 + $0x20] sm:$0xff] }
  0x99   : > { %534 = vst [vmem:[#allocation2 + $0x38] sm:$0xf0] %v528_v3  ;;  %510 = vst [vmem:[#allocation2 + $0x38] sm:$0xf] %v504_v4  ;;  %v3161_v7 = vpop.permute.xlu1 %2721  ;;  %v3163_v8 = vpop.permute.xlu0 %2716  ;;  %v2569_v9 = vpack.c.bf16 %v779_v6, %v776_v5 }
  0x9a   : > { %v2724_v10 = vunpack.i.h.bf16 %v3161_v7  ;;  %v2723_v11 = vunpack.i.l.bf16 %v3161_v7  ;;  %v2719_v12 = vunpack.i.h.bf16 %v3163_v8  ;;  %v2718_v14 = vunpack.i.l.bf16 %v3163_v8 }
  0x9b   : > { %2570 = vmatprep.subr.bf16.mxu0 %v2569_v9 }
  0x9c   : > { %v577_v15 = vsel %vm551_vm6, %v2723_v11, %v2724_v10  ;;  %v553_v17 = vsel %vm551_vm6, %v2718_v14, %v2719_v12  ;;  %v778_v19 = vld [vmem:[#allocation2 + $0x18] sm:$0xff] }
  0x9d   : > { %v775_v18 = vld [vmem:[#allocation2] sm:$0xff]  ;;  %583 = vst [vmem:[#allocation2 + $0x50] sm:$0xf0] %v577_v15  ;;  %559 = vst [vmem:[#allocation2 + $0x50] sm:$0xf] %v553_v17  ;;  %v2732_v20 = vpop.permute.xlu1 %2731  ;;  %v2727_v21 = vpop.permute.xlu0 %2726 }
  0x9e   : > { %v2571_v22 = vpack.c.bf16 %v778_v19, %v775_v18  ;;  %v2734_v23 = vunpack.i.h.bf16 %v2732_v20  ;;  %v2733_v24 = vunpack.i.l.bf16 %v2732_v20  ;;  %v2729_v25 = vunpack.i.h.bf16 %v2727_v21 }
  0x9f   : > { %v2728_v26 = vunpack.i.l.bf16 %v2727_v21 }
  0xa0   : > { %2572 = vmatpush1.bf16.msra.mxu0 %v2571_v22  ;;  %v552_v27 = vsel %vm551_vm6, %v2733_v24, %v2718_v14  ;;  %v576_v28 = vsel %vm551_vm6, %v2734_v23, %v2723_v11  ;;  %v527_v29 = vsel %vm502_vm5, %v2729_v25, %v2713_v63  ;;  %v782_v50 = vld [vmem:[#allocation2 + $0x38] sm:$0xff] }
  0xa1   : > { %v503_v30 = vsel %vm502_vm5, %v2728_v26, %v2708_v1  ;;  %558 = vst [vmem:[#allocation2 + $0x48] sm:$0xf] %v552_v27  ;;  %582 = vst [vmem:[#allocation2 + $0x48] sm:$0xf0] %v576_v28  ;;  %v2742_v31 = vpop.permute.xlu1 %2741  ;;  %v2737_v36 = vpop.permute.xlu0 %2736 }
  0xa2   : > { %533 = vst [vmem:[#allocation2 + $0x30] sm:$0xf0] %v527_v29  ;;  %509 = vst [vmem:[#allocation2 + $0x30] sm:$0xf] %v503_v30  ;;  %v2744_v38 = vunpack.i.h.bf16 %v2742_v31  ;;  %v2743_v39 = vunpack.i.l.bf16 %v2742_v31  ;;  %v2739_v40 = vunpack.i.h.bf16 %v2737_v36  ;;  %v2738_v44 = vunpack.i.l.bf16 %v2737_v36 }
  0xa4   : > { %v456_v46 = vsel %vm453_vm3, %v2689_v35, %v2743_v39  ;;  %v480_v47 = vsel %vm453_vm3, %v2694_v43, %v2744_v38  ;;  %v405_v48 = vsel %vm402_vm4, %v2679_v37, %v2738_v44  ;;  %v430_v49 = vsel %vm402_vm4, %v2684_v45, %v2739_v40  ;;  %v785_v51 = vld [vmem:[#allocation2 + $0x50] sm:$0xff] }
  0xa5   : > { %462 = vst.msk [vmem:[#allocation2 + $0x28] sm:$0xf] %vm411_vm0, %v456_v46  ;;  %412 = vst.msk [vmem:[#allocation2 + $0x10] sm:$0xf] %vm411_vm0, %v405_v48  ;;  %v2752_v32 = vpop.permute.xlu1 %2751  ;;  %v2747_v35 = vpop.permute.xlu0 %2746  ;;  %v2573_v34 = vpack.c.bf16 %v785_v51, %v782_v50 }
  0xa6   : > { %486 = vst.msk [vmem:[#allocation2 + $0x28] sm:$0xf0] %vm436_vm1, %v480_v47  ;;  %437 = vst.msk [vmem:[#allocation2 + $0x10] sm:$0xf0] %vm436_vm1, %v430_v49  ;;  %v2754_v41 = vunpack.i.h.bf16 %v2752_v32  ;;  %v2753_v37 = vunpack.i.l.bf16 %v2752_v32  ;;  %v2749_v43 = vunpack.i.h.bf16 %v2747_v35  ;;  %v2748_v42 = vunpack.i.l.bf16 %v2747_v35 }
  0xa7   : > { %2574 = vmatprep.subr.bf16.mxu0 %v2573_v34 }
  0xa8   : > { %647 = vst.msk [vmem:[#allocation2 + $0x88] sm:$0xf0] %vm436_vm1, %v2754_v41  ;;  %v641_v45 = vsel %vm618_vm7, %v2753_v37, %v2754_v41  ;;  %v620_v52 = vsel %vm618_vm7, %v2748_v42, %v2749_v43  ;;  %v784_v54 = vld [vmem:[#allocation2 + $0x48] sm:$0xff] }
  0xa9   : > { %626 = vst.msk [vmem:[#allocation2 + $0x88] sm:$0xf] %vm411_vm0, %v2749_v43  ;;  %v781_v53 = vld [vmem:[#allocation2 + $0x30] sm:$0xff]  ;;  %646 = vst [vmem:[#allocation2 + $0x80] sm:$0xf0] %v641_v45  ;;  %v2762_v55 = vpop.permute.xlu1 %2761  ;;  %v2757_v56 = vpop.permute.xlu0 %2756 }
  0xaa   : > { %625 = vst [vmem:[#allocation2 + $0x80] sm:$0xf] %v620_v52  ;;  %v2575_v57 = vpack.c.bf16 %v784_v54, %v781_v53  ;;  %v2764_v58 = vunpack.i.h.bf16 %v2762_v55  ;;  %v2763_v63 = vunpack.i.l.bf16 %v2762_v55  ;;  %v2759_v1 = vunpack.i.h.bf16 %v2757_v56 }
  0xab   : > { %v2758_v3 = vunpack.i.l.bf16 %v2757_v56 }
  0xac   : > { %2576 = vmatpush1.bf16.msra.mxu0 %v2575_v57  ;;  %v505_v4 = vsel %vm502_vm5, %v2709_v0, %v2763_v63  ;;  %v529_v5 = vsel %vm502_vm5, %v2714_v62, %v2764_v58  ;;  %v640_v6 = vsel %vm618_vm7, %v2759_v1, %v2753_v37 }
  0xad   : > { %v619_v9 = vsel %vm618_vm7, %v2758_v3, %v2748_v42  ;;  %v777_v11 = vld [vmem:[#allocation2 + $0x10] sm:$0xff]  ;;  %v780_v14 = vld [vmem:[#allocation2 + $0x28] sm:$0xff]  ;;  %511 = vst.msk [vmem:[#allocation2 + $0x40] sm:$0xf] %vm411_vm0, %v505_v4  ;;  %645 = vst [vmem:[#allocation2 + $0x78] sm:$0xf0] %v640_v6  ;;  %v2772_v60 = vpop.permute.xlu1 %2771  ;;  %v2767_v15 = vpop.permute.xlu0 %2766 }
  0xae   : > { %535 = vst.msk [vmem:[#allocation2 + $0x40] sm:$0xf0] %vm436_vm1, %v529_v5  ;;  %624 = vst [vmem:[#allocation2 + $0x78] sm:$0xf] %v619_v9  ;;  %v2586_v0 = vpack.c.bf16 %v780_v14, %v777_v11  ;;  %v2774_v17 = vunpack.i.h.bf16 %v2772_v60  ;;  %v2773_v59 = vunpack.i.l.bf16 %v2772_v60  ;;  %v2769_v18 = vunpack.i.h.bf16 %v2767_v15 }
  0xaf   : > { %v2768_v62 = vunpack.i.l.bf16 %v2767_v15  ;;  %v774_v15 = vld [vmem:[%s3598_s5] sm:$0xf] }
  0xb0   : > { %2587 = vmatpush3.bf16.msra.mxu1 %v2586_v0  ;;  %668 = vst.msk [vmem:[#allocation2 + $0xa0] sm:$0xf] %vm411_vm0, %v2774_v17  ;;  %v662_v19 = vsel %vm660_vm8, %v2773_v59, %v2774_v17  ;;  %v578_v20 = vsel %vm551_vm6, %v2724_v10, %v2769_v18  ;;  %v792_v41 = vld [vmem:[#allocation2 + $0x88] sm:$0xff]  ;;  %v1291_v18 = vld [vmem:[%s3074_s21 + $0x2] sm:$0x3f] }
  0xb1   : > { %v554_v21 = vsel %vm551_vm6, %v2719_v12, %v2768_v62  ;;  %v791_v22 = vld [vmem:[#allocation2 + $0x80] sm:$0xff]  ;;  %2588 = vmatprep.subr.bf16.mxu1 %v2959_v33  ;;  %667 = vst [vmem:[#allocation2 + $0x98] sm:$0xf] %v662_v19  ;;  %584 = vst.msk [vmem:[#allocation2 + $0x58] sm:$0xf0] %vm436_vm1, %v578_v20  ;;  %v2782_v23 = vpop.permute.xlu1 %2781  ;;  %v2777_v24 = vpop.permute.xlu0 %2776  ;;  %v2592_v53 = vpack.c.bf16 %v792_v41, %v3088_v13  ;;  %v1293_v62 = vunpack.c.h.bf16 %v1291_v18  ;;  %v1292_v19 = vunpack.c.l.bf16 %v1291_v18 }
  0xb2   : > { %560 = vst.msk [vmem:[#allocation2 + $0x58] sm:$0xf] %vm411_vm0, %v554_v21  ;;  %v2577_v25 = vpack.c.bf16 %v791_v22, %v3080_v61  ;;  %v2784_v7 = vunpack.i.h.bf16 %v2782_v23  ;;  %v2783_v26 = vunpack.i.l.bf16 %v2782_v23  ;;  %v2779_v10 = vunpack.i.h.bf16 %v2777_v24  ;;  %v1251_v22 = vld [vmem:[%s3074_s21 + $0x2] sm:$0x3f] }
  0xb3   : > { %v2778_v27 = vunpack.i.l.bf16 %v2777_v24  ;;  %v1297_v20 = vcombine.low %v1293_v62, %v1293_v62  ;;  %v1252_v23 = vunpack.c.l.bf16 %v1251_v22 }
  0xb4   : > { %2578 = vmatprep.subr.bf16.mxu0 %v2577_v25  ;;  %710 = vst.msk [vmem:[#allocation2 + $0xb8] sm:$0xf] %vm411_vm0, %v2784_v7  ;;  %v704_v8 = vsel %vm702_vm9, %v2783_v26, %v2784_v7  ;;  %v1253_v25 = vunpack.c.h.bf16 %v1251_v22 }
  0xb5   : > { %689 = vst.msk [vmem:[#allocation2 + $0xa0] sm:$0xf0] %vm436_vm1, %v2779_v10  ;;  %v683_v12 = vsel %vm660_vm8, %v2778_v27, %v2779_v10  ;;  %v790_v28 = vld [vmem:[#allocation2 + $0x78] sm:$0xff]  ;;  %709 = vst [vmem:[#allocation2 + $0xb0] sm:$0xf] %v704_v8  ;;  %v2792_v29 = vpop.permute.xlu1 %2791  ;;  %v2787_v30 = vpop.permute.xlu0 %2786  ;;  %v783_v47 = vld [vmem:[#allocation2 + $0x40] sm:$0xff]  ;;  %v2866_v21 = vpack.i.bf16 %v1297_v20, %v1292_v19  ;;  %v1256_v24 = vcombine.low %v1252_v23, %v1252_v23 }
  0xb6   : > { %688 = vst [vmem:[#allocation2 + $0x98] sm:$0xf0] %v683_v12  ;;  %v2579_v61 = vpack.c.bf16 %v790_v28, %v3082_v2  ;;  %v2794_v31 = vunpack.i.h.bf16 %v2792_v29  ;;  %v2793_v36 = vunpack.i.l.bf16 %v2792_v29  ;;  %v2789_v38 = vunpack.i.h.bf16 %v2787_v30 }
  0xb7   : > { %v2788_v39 = vunpack.i.l.bf16 %v2787_v30  ;;  %2867 = vrot.lane.b32.xlu0 %v2866_v21, %s2962_s23  ;;  %v1257_v7 = vcombine.low %v1253_v25, %v1253_v25  ;;  %v1296_v10 = vcombine.low %v1292_v19, %v1292_v19 }
  0xb8   : > { %2580 = vmatpush1.bf16.msra.mxu0 %v2579_v61  ;;  %v661_v40 = vsel %vm660_vm8, %v2793_v36, %v2773_v59  ;;  %v682_v44 = vsel %vm660_vm8, %v2794_v31, %v2778_v27  ;;  %731 = vst.msk [vmem:[#allocation2 + $0xb8] sm:$0xf0] %vm436_vm1, %v2789_v38 }
  0xb9   : > { %v725_v46 = vsel %vm702_vm9, %v2788_v39, %v2789_v38  ;;  %v786_v48 = vld [vmem:[#allocation2 + $0x58] sm:$0xff]  ;;  %666 = vst [vmem:[#allocation2 + $0x90] sm:$0xf] %v661_v40  ;;  %687 = vst [vmem:[#allocation2 + $0x90] sm:$0xf0] %v682_v44  ;;  %v2802_v2 = vpop.permute.xlu1 %2801  ;;  %v2797_v49 = vpop.permute.xlu0 %2796 }
  0xba   : > { %730 = vst [vmem:[#allocation2 + $0xb0] sm:$0xf0] %v725_v46  ;;  %v2589_v50 = vpack.c.bf16 %v786_v48, %v783_v47  ;;  %v2804_v51 = vunpack.i.h.bf16 %v2802_v2  ;;  %v2803_v32 = vunpack.i.l.bf16 %v2802_v2  ;;  %v2799_v35 = vunpack.i.h.bf16 %v2797_v49 }
  0xbb   : > { %v2798_v34 = vunpack.i.l.bf16 %v2797_v49  ;;  %1258 = vrot.lane.b32.xlu0 %v1256_v24, %s2961_s22 }
  0xbc   : > { %2590 = vmatpush3.bf16.msra.mxu1 %v2589_v50  ;;  %752 = vst.msk [vmem:[#allocation2 + $0xd0] sm:$0xf] %vm411_vm0, %v2804_v51  ;;  %v746_v37 = vsel %vm744_vm10, %v2803_v32, %v2804_v51  ;;  %v724_v42 = vsel %vm702_vm9, %v2799_v35, %v2788_v39  ;;  %v795_v58 = vld [vmem:[#allocation2 + $0xa0] sm:$0xff] }
  0xbd   : > { %v703_v43 = vsel %vm702_vm9, %v2798_v34, %v2783_v26  ;;  %2591 = vmatprep.subr.bf16.mxu1 %v2959_v33  ;;  %751 = vst [vmem:[#allocation2 + $0xc8] sm:$0xf] %v746_v37  ;;  %729 = vst [vmem:[#allocation2 + $0xa8] sm:$0xf0] %v724_v42  ;;  %v2812_v45 = vpop.permute.xlu1 %2811  ;;  %v2807_v52 = vpop.permute.xlu0 %2806  ;;  %v794_v5 = vld [vmem:[#allocation2 + $0x98] sm:$0xff]  ;;  %v2861_v26 = vpack.i.bf16 %v1257_v7, %v1252_v23 }
  0xbe   : > { %708 = vst [vmem:[#allocation2 + $0xa8] sm:$0xf] %v703_v43  ;;  %v2814_v54 = vunpack.i.h.bf16 %v2812_v45  ;;  %v2813_v55 = vunpack.i.l.bf16 %v2812_v45  ;;  %v2809_v56 = vunpack.i.h.bf16 %v2807_v52  ;;  %v2808_v57 = vunpack.i.l.bf16 %v2807_v52  ;;  %v384_v23 = vld [vmem:[%s3288_s13] ss:$2 sm:$0x7] }
  0xbf   : > { %v798_v63 = vld [vmem:[#allocation2 + $0xb8] sm:$0xff]  ;;  %2862 = vrot.lane.b32.xlu1 %v2861_v26, %s2961_s22  ;;  %1298 = vrot.lane.b32.xlu0 %v1296_v10, %s2962_s23 }
  0xc0   : > { %2593 = vmatpush3.bf16.msra.mxu1 %v2592_v53  ;;  %v745_v1 = vsel %vm744_vm10, %v2813_v55, %v2803_v32  ;;  %773 = vst.msk [vmem:[#allocation2 + $0xd0] sm:$0xf0] %vm436_vm1, %v2809_v56  ;;  %v766_v3 = vsel %vm744_vm10, %v2814_v54, %v2808_v57  ;;  %v767_v4 = vsel %vm744_vm10, %v2808_v57, %v2809_v56  ;;  %v793_v11 = vld [vmem:[#allocation2 + $0x90] sm:$0xff] }
  0xc1   : > { %2594 = vmatprep.subr.bf16.mxu1 %v2959_v33  ;;  %v797_v6 = vld [vmem:[#allocation2 + $0xb0] sm:$0xff]  ;;  %v2595_v13 = vpack.c.bf16 %v798_v63, %v795_v58  ;;  %750 = vst [vmem:[#allocation2 + $0xc0] sm:$0xf] %v745_v1  ;;  %771 = vst [vmem:[#allocation2 + $0xc0] sm:$0xf0] %v766_v3  ;;  %v2823_v8 = vpop.permute.xlu1 %2822 }
  0xc2   : > { %772 = vst [vmem:[#allocation2 + $0xc8] sm:$0xf0] %v767_v4  ;;  %v2581_v9 = vpack.c.bf16 %v797_v6, %v794_v5  ;;  %v2825_v28 = vunpack.i.h.bf16 %v2823_v8  ;;  %v2824_v29 = vunpack.i.l.bf16 %v2823_v8 }
  0xc4   : > { %2582 = vmatprep.subr.bf16.mxu0 %v2581_v9  ;;  %2596 = vmatpush3.bf16.msra.mxu1 %v2595_v13  ;;  %v1070_v31 = vsel %vm453_vm3, %v2824_v29, %v2825_v28 }
  0xc5   : > { %v796_v14 = vld [vmem:[#allocation2 + $0xa8] sm:$0xff]  ;;  %2517 = vmatprep.subr.mxu1 %v2964_v16  ;;  %1076 = vst [vmem:[#allocation2 + $0x20] sm:$0xf0] %v1070_v31  ;;  %v2828_v38 = vpop.permute.xlu1 %2827 }
  0xc6   : > { %v2583_v60 = vpack.c.bf16 %v796_v14, %v793_v11  ;;  %v2830_v40 = vunpack.i.h.bf16 %v2828_v38  ;;  %v2829_v44 = vunpack.i.l.bf16 %v2828_v38  ;;  %v957_v14 = vlaneseq }
  0xc7   : > { %v801_v0 = vld [vmem:[#allocation2 + $0xd0] sm:$0xff] }
  0xc8   : > { %2584 = vmatpush1.bf16.msra.mxu0 %v2583_v60  ;;  %2518 = vmatpush3.msra.mxu1 %v801_v0  ;;  %v799_v59 = vld [vmem:[#allocation2 + $0xc0] sm:$0xff] }
  0xc9   : > { %v800_v17 = vld [vmem:[#allocation2 + $0xc8] sm:$0xff]  ;;  %2520 = vmatmul.mubr.msk.f32.vlgmr.msra.gmra.mrb[0].mxu1 %vm808_vm11, %v774_v15  ;;  %2613 = vmatprep.subr.bf16.mxu1 %v2959_v33  ;;  %v2833_v50 = vpop.permute.xlu1 %2832 }
  0xca   : > { %828 = vmatprep.subr.mxu0 %v800_v17  ;;  %2540 = vmatprep.mubr.msk.f32.mxu1 %vm2965_vm2, %v2964_v16  ;;  %v2835_v32 = vunpack.i.h.bf16 %v2833_v50  ;;  %v2834_v35 = vunpack.i.l.bf16 %v2833_v50 }
  0xcc   : > { %829 = vmatpush1.msra.mxu0 %v799_v59  ;;  %v1069_v37 = vsel %vm453_vm3, %v2834_v35, %v2824_v29  ;;  %v1071_v43 = vsel %vm453_vm3, %v2825_v28, %v2835_v32  ;;  %v3283_v59 = vshrl.u32 %v957_v14, 7 }
  0xcd   : > { %2448 = vmatmul.mubr.msk.f32.vlgmr.msra.gmra.mrb[0].mxu0 %vm808_vm11, %v774_v15  ;;  %1075 = vst [vmem:[#allocation2 + $0x18] sm:$0xf0] %v1069_v37  ;;  %1077 = vst.msk [vmem:[#allocation2 + $0x28] sm:$0xf0] %vm436_vm1, %v1071_v43  ;;  %v2843_v45 = vpop.permute.xlu1 %2842  ;;  %v1331_v43 = vld [vmem:[%s3074_s21 + $0x2] sm:$0x3f] }
  0xce   : > { %1455 = vmatprep.mubr.f32.mxu0 %v2964_v16  ;;  %v3259_v27 = vpop.permute.xlu0 %805  ;;  %v2845_v53 = vunpack.i.h.bf16 %v2843_v45  ;;  %v2844_v54 = vunpack.i.l.bf16 %v2843_v45  ;;  %v967_v19 = vsub.s32 2, %v3283_v59  ;;  %v3297_v26 = vsub.s32 0, %v3283_v59 }
  0xcf   : > { %v963_v28 = vsub.s32 1, %v3283_v59 }
  0xd0   : > { %v1164_v56 = vsel %vm551_vm6, %v2844_v54, %v2845_v53  ;;  %v3302_v8 = vrot.slane %v384_v23, %v967_v19  ;;  %v3307_v31 = vrot.slane %v384_v23, %v3297_v26 }
  0xd1   : > { %1170 = vst [vmem:[#allocation2 + $0x50] sm:$0xf0] %v1164_v56  ;;  %v2848_v57 = vpop.permute.xlu1 %2847 }
  0xd2   : > { %v2818_v12 = vpop.permute.xlu0 %2817  ;;  %v2850_v58 = vunpack.i.h.bf16 %v2848_v57  ;;  %v2849_v63 = vunpack.i.l.bf16 %v2848_v57 }
  0xd3   : > { %v2820_v30 = vunpack.i.h.bf16 %v2818_v12  ;;  %v2819_v61 = vunpack.i.l.bf16 %v2818_v12 }
  0xd5   : > { %v1023_v36 = vsel %vm402_vm4, %v2819_v61, %v2820_v30  ;;  %v1024_v48 = vsel %vm402_vm4, %v2820_v30, %v2830_v40  ;;  %v1022_v2 = vsel %vm402_vm4, %v2829_v44, %v2819_v61  ;;  %v2853_v4 = vpop.permute.xlu1 %2852  ;;  %v3313_v40 = vrot.slane %v384_v23, %v963_v28 }
  0xd6   : > { %1029 = vst [vmem:[#allocation2 + $0x8] sm:$0xf0] %v1023_v36  ;;  %v2838_v39 = vpop.permute.xlu0 %2837  ;;  %1028 = vst [vmem:[#allocation2] sm:$0xf0] %v1022_v2  ;;  %v2855_v5 = vunpack.i.h.bf16 %v2853_v4  ;;  %v2854_v6 = vunpack.i.l.bf16 %v2853_v4 }
  0xd7   : > { %v2840_v46 = vunpack.i.h.bf16 %v2838_v39  ;;  %v2839_v47 = vunpack.i.l.bf16 %v2838_v39  ;;  %1030 = vst.msk [vmem:[#allocation2 + $0x10] sm:$0xf0] %vm436_vm1, %v1024_v48 }
  0xd8   : > { %v1163_v13 = vsel %vm551_vm6, %v2854_v6, %v2844_v54  ;;  %v1165_v9 = vsel %vm551_vm6, %v2845_v53, %v2855_v5  ;;  %v1333_v53 = vunpack.c.h.bf16 %v1331_v43  ;;  %v2451_v5 = vld [vmem:[%s3599_s6 + $0x4] sm:$0xf] }
  0xd9   : > { %v1117_v49 = vsel %vm502_vm5, %v2839_v47, %v2840_v46  ;;  %v1116_v1 = vsel %vm502_vm5, %v2849_v63, %v2839_v47  ;;  %v1118_v3 = vsel %vm502_vm5, %v2840_v46, %v2850_v58  ;;  %1169 = vst [vmem:[#allocation2 + $0x48] sm:$0xf0] %v1163_v13  ;;  %1171 = vst.msk [vmem:[#allocation2 + $0x58] sm:$0xf0] %vm436_vm1, %v1165_v9  ;;  %v1332_v63 = vunpack.c.l.bf16 %v1331_v43  ;;  %v1616_v13 = vld [vmem:[%s3343_s20] sm:$0xff] }
  0xda   : > { %1123 = vst [vmem:[#allocation2 + $0x38] sm:$0xf0] %v1117_v49  ;;  %v2858_v51 = vpop.permute.xlu0 %2857  ;;  %1122 = vst [vmem:[#allocation2 + $0x30] sm:$0xf0] %v1116_v1  ;;  %v1337_v1 = vcombine.low %v1333_v53, %v1333_v53  ;;  %v1773_v9 = vld [vmem:[%s3343_s20 + $0x2] sm:$0x3f]  ;;  %v1618_v14 = vunpack.c.h.bf16 %v1616_v13 }
  0xdb   : > { %v2860_v34 = vunpack.i.h.bf16 %v2858_v51  ;;  %v2859_v41 = vunpack.i.l.bf16 %v2858_v51  ;;  %1124 = vst.msk [vmem:[#allocation2 + $0x40] sm:$0xf0] %vm436_vm1, %v1118_v3  ;;  %v1336_v6 = vcombine.low %v1332_v63, %v1332_v63 }
  0xdc   : > { %v2871_v3 = vpack.i.bf16 %v1337_v1, %v1332_v63 }
  0xdd   : > { %v1225_v42 = vsel %vm618_vm7, %v2859_v41, %v2860_v34  ;;  %1231 = vst.msk [vmem:[#allocation2 + $0x88] sm:$0xf0] %vm436_vm1, %v2860_v34 }
  0xde   : > { %1230 = vst [vmem:[#allocation2 + $0x80] sm:$0xf0] %v1225_v42  ;;  %v1219_v52 = vpop.permute.xlu0 %1218  ;;  %v1742_v42 = vld [vmem:[%s3343_s20 + $0x2] sm:$0x3f] }
  0xdf   : > { %v1224_v55 = vsel %vm618_vm7, %v1219_v52, %v2859_v41  ;;  %v1743_v45 = vunpack.c.l.bf16 %v1742_v42  ;;  %v1744_v52 = vunpack.c.h.bf16 %v1742_v42 }
  0xe0   : > { %1229 = vst [vmem:[#allocation2 + $0x78] sm:$0xf0] %v1224_v55 }
  0xe1   : > { %v1747_v55 = vcombine.low %v1743_v45, %v1743_v45  ;;  %v1748_v56 = vcombine.low %v1744_v52, %v1744_v52 }
 0x129   : > { %v2868_v11 = vpop.permute.xlu0 %2867 }
 0x12a   : > { %v2870_v60 = vunpack.i.h.bf16 %v2868_v11  ;;  %v2869_v15 = vunpack.i.l.bf16 %v2868_v11  ;;  %v1617_v11 = vunpack.c.l.bf16 %v1616_v13 }
 0x12c   : > { %v1305_v0 = vsel %vm702_vm9, %v2869_v15, %v2870_v60  ;;  %1311 = vst.msk [vmem:[#allocation2 + $0xb8] sm:$0xf0] %vm436_vm1, %v2870_v60  ;;  %v1622_v60 = vcombine.low %v1618_v14, %v1618_v14 }
 0x12d   : > { %1310 = vst [vmem:[#allocation2 + $0xb0] sm:$0xf0] %v1305_v0  ;;  %v1259_v17 = vpop.permute.xlu0 %1258  ;;  %v1775_v0 = vunpack.c.h.bf16 %v1773_v9 }
 0x131   : > { %v2863_v18 = vpop.permute.xlu1 %2862  ;;  %v1299_v62 = vpop.permute.xlu0 %1298 }
 0x132   : > { %v2865_v20 = vunpack.i.h.bf16 %v2863_v18  ;;  %v2864_v21 = vunpack.i.l.bf16 %v2863_v18  ;;  %v1304_v22 = vsel %vm702_vm9, %v1299_v62, %v2869_v15  ;;  %v1574_v15 = vcombine.low %v1617_v11, %v1617_v11 }
 0x133   : > { %1309 = vst [vmem:[#allocation2 + $0xa8] sm:$0xf0] %v1304_v22  ;;  %v1774_v62 = vunpack.c.l.bf16 %v1773_v9 }
 0x134   : > { %v1264_v24 = vsel %vm660_vm8, %v1259_v17, %v2864_v21  ;;  %v1265_v25 = vsel %vm660_vm8, %v2864_v21, %v2865_v20  ;;  %1271 = vst.msk [vmem:[#allocation2 + $0xa0] sm:$0xf0] %vm436_vm1, %v2865_v20  ;;  %v2881_v17 = vpack.i.bf16 %v1622_v60, %v1617_v11  ;;  %v2886_v18 = vpack.i.bf16 %v1618_v14, %v1574_v15  ;;  %v1853_v21 = vld [vmem:[%s3343_s20 + $0x2] sm:$0x3f] }
 0x135   : > { %1269 = vst [vmem:[#allocation2 + $0x90] sm:$0xf0] %v1264_v24  ;;  %1270 = vst [vmem:[#allocation2 + $0x98] sm:$0xf0] %v1265_v25  ;;  %v1779_v20 = vcombine.low %v1775_v0, %v1775_v0  ;;  %v1855_v23 = vunpack.c.h.bf16 %v1853_v21  ;;  %v1778_v24 = vcombine.low %v1774_v62, %v1774_v62  ;;  %v3376_v25 = vunpack.c.l.bf16 %v1853_v21 }
 0x137   : > { %v2916_v22 = vpack.i.bf16 %v1779_v20, %v1774_v62 }
 0x19c   : > { %v949_v7 = vpop.f32.mrb[0].mxu1 }
 0x19d   : > { %v950_v10 = vadd.f32 %v949_v7, %v3259_v27  ;;  %v2521_v12 = vpop.f32.mrb[1].mxu1  ;;  %v1859_v7 = vcombine.low %v1855_v23, %v1855_v23 }
 0x19f   : > { %v955_v29 = vmax.f32 %v950_v10, 0.0  ;;  %v2926_v10 = vpack.i.bf16 %v1859_v7, %v3376_v25 }
 0x1a0   : > { %v878_v30 = vpop.f32.mrb[0].mxu0 }
 0x1a1   : > { %v879_v61 = vadd.f32 %v878_v30, %v3259_v27  ;;  %v880_v36 = vpop.f32.mrb[1].mxu0  ;;  %v974_v38 = vmul.f32 %v3302_v8, %v955_v29 }
 0x1a2   : > { %v881_v39 = vadd.f32 %v880_v36, %v3259_v27 }
 0x1a3   : > { %v953_v44 = vmax.f32 %v879_v61, 0.0  ;;  %983 = vst.msk [vmem:[#allocation3 + $0xc] sm:$0xf] %vm411_vm0, %v974_v38 }
 0x1a4   : > { %v954_v46 = vmax.f32 %v881_v39, 0.0 }
 0x1a5   : > { %v972_v47 = vmul.f32 %v3307_v31, %v953_v44 }
 0x1a6   : > { %v973_v48 = vmul.f32 %v3313_v40, %v954_v46 }
 0x1a8   : > { %v980_v2 = vcombine.low %v972_v47, %v973_v48  ;;  %v2945_v49 = vcombine.low %v973_v48, %v973_v48 }
 0x1aa   : > { %982 = vst [vmem:[#allocation3 + $0x4] sm:$0xff] %v980_v2  ;;  %1177 = vst [vmem:[#allocation2 + $0x60] sm:$0xf] %v980_v2  ;;  %v1173_v50 = vld [vmem:[#allocation3 + $0xc] sm:$0xf] }
 0x1ab   : > { %v1233_v51 = vld [vmem:[#allocation3 + $0xc] sm:$0xf]  ;;  %1179 = vst.msk [vmem:[#allocation2 + $0x70] sm:$0xf] %vm411_vm0, %v1173_v50  ;;  %1178 = vst [vmem:[#allocation2 + $0x68] sm:$0xf] %v2945_v49 }
 0x1ac   : > { %v1193_v32 = vld [vmem:[#allocation3 + $0xc] sm:$0xf]  ;;  %1241 = vrot.lane.b32.xlu0 %v1233_v51, %s2961_s22 }
 0x1ad   : > { %1201 = vrot.lane.b32.xlu1 %v1193_v32, %s2960_s18  ;;  %v1273_v27 = vld [vmem:[#allocation3 + $0xc] sm:$0xf] }
 0x1ae   : > { %v1313_v4 = vld [vmem:[#allocation3 + $0xc] sm:$0xf] }
 0x1b1   : > { %1281 = vrot.lane.b32.xlu1 %v1273_v27, %s2962_s23  ;;  %v1032_v35 = vld [vmem:[#allocation3 + $0x8] sm:$0xff]  ;;  %v984_v34 = vld [vmem:[#allocation3] sm:$0xff] }
 0x1b2   : > { %1041 = vrot.lane.b32.xlu0 %v1032_v35, %s2955_s14  ;;  %v988_v41 = vcombine.high %v984_v34, %v984_v34  ;;  %v1036_v37 = vcombine.high %v1032_v35, %v1032_v35  ;;  %v3348_v54 = vld [vmem:[#allocation2 + $0x68] sm:$0xff]  ;;  %v3351_v57 = vld [vmem:[#allocation2 + $0x60] sm:$0xff]  ;;  %v3353_v58 = vld [vmem:[#allocation2 + $0x70] sm:$0xff] }
 0x1b3   : > { %1752 = vst [vmem:[#allocation2 + $0x68] sm:$0xf0] %v1743_v45  ;;  %1751 = vst [vmem:[#allocation2 + $0x60] sm:$0xf0] %v1747_v55 }
 0x1b4   : > { %1753 = vst.msk [vmem:[#allocation2 + $0x70] sm:$0xf0] %vm436_vm1, %v1748_v56 }
 0x1b5   : > { %994 = vrot.lane.b32.xlu1 %v1032_v35, %s2956_s15 }
 0x1b6   : > { %990 = vrot.lane.b32.xlu0 %v984_v34, %s2956_s15 }
 0x1b9   : > { %1088 = vrot.lane.b32.xlu1 %v1032_v35, %s2957_s16 }
 0x1ba   : > { %1037 = vrot.lane.b32.xlu0 %v984_v34, %s2955_s14 }
 0x1bd   : > { %1197 = vrot.lane.b32.xlu1 %v980_v2, %s2960_s18 }
 0x1be   : > { %1135 = vrot.lane.b32.xlu0 %v1032_v35, %s2958_s17 }
 0x1c1   : > { %1237 = vrot.lane.b32.xlu1 %v980_v2, %s2961_s22 }
 0x1c2   : > { %1084 = vrot.lane.b32.xlu0 %v984_v34, %s2957_s16 }
 0x1c5   : > { %1277 = vrot.lane.b32.xlu1 %v980_v2, %s2962_s23 }
 0x1c6   : > { %1131 = vrot.lane.b32.xlu0 %v984_v34, %s2958_s17 }
 0x1c9   : > { %992 = vrot.lane.b32.xlu1 %v988_v41, %s2956_s15 }
 0x1ca   : > { %1086 = vrot.lane.b32.xlu0 %v988_v41, %s2957_s16 }
 0x1cd   : > { %1039 = vrot.lane.b32.xlu1 %v988_v41, %s2955_s14 }
 0x1ce   : > { %996 = vrot.lane.b32.xlu0 %v1036_v37, %s2956_s15 }
 0x1d1   : > { %1133 = vrot.lane.b32.xlu1 %v988_v41, %s2958_s17 }
 0x1d2   : > { %1199 = vrot.lane.b32.xlu0 %v2945_v49, %s2960_s18 }
 0x1d5   : > { %1043 = vrot.lane.b32.xlu1 %v1036_v37, %s2955_s14 }
 0x1d6   : > { %1137 = vrot.lane.b32.xlu0 %v1036_v37, %s2958_s17 }
 0x1d9   : > { %1090 = vrot.lane.b32.xlu1 %v1036_v37, %s2957_s16 }
 0x1da   : > { %1279 = vrot.lane.b32.xlu0 %v2945_v49, %s2962_s23 }
 0x1dd   : > { %1239 = vrot.lane.b32.xlu1 %v2945_v49, %s2961_s22 }
 0x1de   : > { %1321 = vrot.lane.b32.xlu0 %v1313_v4, %s2963_s24 }
 0x1e1   : > { %2872 = vrot.lane.b32.xlu1 %v2871_v3, %s2963_s24 }
 0x1e2   : > { %1317 = vrot.lane.b32.xlu0 %v980_v2, %s2963_s24 }
 0x1e5   : > { %1319 = vrot.lane.b32.xlu1 %v2945_v49, %s2963_s24 }
 0x1e6   : > { %1385 = vperm.xlu0 %2815, %v2451_v5  }
 0x1e9   : > { %1338 = vrot.lane.b32.xlu1 %v1336_v6, %s2963_s24 }
 0x1ea   : > { %2882 = vrot.lane.b32.xlu0 %v2881_v17, %s2955_s14 }
 0x1ed   : > { %2877 = vrot.lane.b32.xlu1 %v2881_v17, %s2956_s15 }
 0x1ee   : > { %2887 = vrot.lane.b32.xlu0 %v2886_v18, %s2956_s15 }
 0x1f1   : > { %2897 = vrot.lane.b32.xlu1 %v2881_v17, %s2957_s16 }
 0x1f2   : > { %2892 = vrot.lane.b32.xlu0 %v2886_v18, %s2955_s14 }
 0x1f5   : > { %2917 = vrot.lane.b32.xlu1 %v2916_v22, %s2960_s18 }
 0x1f6   : > { %2902 = vrot.lane.b32.xlu0 %v2881_v17, %s2958_s17 }
 0x1f9   : > { %1780 = vrot.lane.b32.xlu1 %v1778_v24, %s2960_s18 }
 0x1fa   : > { %2907 = vrot.lane.b32.xlu0 %v2886_v18, %s2957_s16 }
 0x1fd   : > { %2927 = vrot.lane.b32.xlu1 %v2926_v10, %s2962_s23 }
 0x1fe   : > { %2912 = vrot.lane.b32.xlu0 %v2886_v18, %s2958_s17 }
 0x21e   : > { %v3384_v12 = vpop.permute.xlu0 %1241 }
 0x21f   : > { %v1202_v29 = vpop.permute.xlu1 %1201  ;;  %1250 = vst.msk [vmem:[#allocation2 + $0xa0] sm:$0xf] %vm411_vm0, %v3384_v12 }
 0x220   : > { %1210 = vst.msk [vmem:[#allocation2 + $0x88] sm:$0xf] %vm411_vm0, %v1202_v29 }
 0x223   : > { %v3389_v30 = vpop.permute.xlu1 %1281 }
 0x224   : > { %1290 = vst.msk [vmem:[#allocation2 + $0xb8] sm:$0xf] %vm411_vm0, %v3389_v30  ;;  %v1042_v61 = vpop.permute.xlu0 %1041 }
 0x227   : > { %v995_v36 = vpop.permute.xlu1 %994 }
 0x228   : > { %v991_v38 = vpop.permute.xlu0 %990 }
 0x22b   : > { %v1089_v39 = vpop.permute.xlu1 %1088 }
 0x22c   : > { %v1038_v44 = vpop.permute.xlu0 %1037 }
 0x22f   : > { %v1198_v46 = vpop.permute.xlu1 %1197 }
 0x230   : > { %v1136_v47 = vpop.permute.xlu0 %1135 }
 0x233   : > { %v3393_v48 = vpop.permute.xlu1 %1237 }
 0x234   : > { %v1085_v2 = vpop.permute.xlu0 %1084 }
 0x237   : > { %v1278_v49 = vpop.permute.xlu1 %1277 }
 0x238   : > { %v1132_v50 = vpop.permute.xlu0 %1131 }
 0x23b   : > { %v993_v51 = vpop.permute.xlu1 %992 }
 0x23c   : > { %v998_v32 = vsel %vm402_vm4, %v991_v38, %v993_v51  ;;  %v999_v27 = vsel %vm402_vm4, %v993_v51, %v995_v36  ;;  %v1087_v35 = vpop.permute.xlu0 %1086 }
 0x23d   : > { %1004 = vst [vmem:[#allocation2] sm:$0xf] %v998_v32  ;;  %1005 = vst [vmem:[#allocation2 + $0x8] sm:$0xf] %v999_v27  ;;  %v1092_v34 = vsel %vm502_vm5, %v1085_v2, %v1087_v35  ;;  %v1093_v41 = vsel %vm502_vm5, %v1087_v35, %v1089_v39 }
 0x23e   : > { %1098 = vst [vmem:[#allocation2 + $0x30] sm:$0xf] %v1092_v34  ;;  %1099 = vst [vmem:[#allocation2 + $0x38] sm:$0xf] %v1093_v41  ;;  %v1371_v34 = vld [vmem:[#allocation2 + $0x88] sm:$0xff] }
 0x23f   : > { %v1040_v37 = vpop.permute.xlu1 %1039 }
 0x240   : > { %v1045_v43 = vsel %vm453_vm3, %v1038_v44, %v1040_v37  ;;  %v1046_v42 = vsel %vm453_vm3, %v1040_v37, %v1042_v61  ;;  %v997_v45 = vpop.permute.xlu0 %996 }
 0x241   : > { %1051 = vst [vmem:[#allocation2 + $0x18] sm:$0xf] %v1045_v43  ;;  %1052 = vst [vmem:[#allocation2 + $0x20] sm:$0xf] %v1046_v42  ;;  %v1000_v52 = vsel %vm402_vm4, %v995_v36, %v997_v45 }
 0x242   : > { %1006 = vst.msk [vmem:[#allocation2 + $0x10] sm:$0xf] %vm411_vm0, %v1000_v52 }
 0x243   : > { %v1134_v53 = vpop.permute.xlu1 %1133 }
 0x244   : > { %v1139_v55 = vsel %vm551_vm6, %v1132_v50, %v1134_v53  ;;  %v1140_v56 = vsel %vm551_vm6, %v1134_v53, %v1136_v47  ;;  %v1200_v63 = vpop.permute.xlu0 %1199  ;;  %v1355_v5 = vld [vmem:[#allocation2 + $0x8] sm:$0xff]  ;;  %v1354_v9 = vld [vmem:[#allocation2] sm:$0xff] }
 0x245   : > { %1145 = vst [vmem:[#allocation2 + $0x48] sm:$0xf] %v1139_v55  ;;  %1146 = vst [vmem:[#allocation2 + $0x50] sm:$0xf] %v1140_v56  ;;  %v1203_v1 = vsel %vm618_vm7, %v1198_v46, %v1200_v63  ;;  %v1204_v3 = vsel %vm618_vm7, %v1200_v63, %v1202_v29  ;;  %v1361_v18 = vld [vmem:[#allocation2 + $0x38] sm:$0xff]  ;;  %v1360_v21 = vld [vmem:[#allocation2 + $0x30] sm:$0xff]  ;;  %v2620_v56 = vpack.c.bf16 %v1371_v34, %v3353_v58 }
 0x246   : > { %1208 = vst [vmem:[#allocation2 + $0x78] sm:$0xf] %v1203_v1  ;;  %1209 = vst [vmem:[#allocation2 + $0x80] sm:$0xf] %v1204_v3  ;;  %v1377_v1 = vld [vmem:[#allocation2 + $0xb8] sm:$0xff] }
 0x247   : > { %v1044_v4 = vpop.permute.xlu1 %1043  ;;  %v2450_v58 = vld [vmem:[%s3598_s5 + $0x4] sm:$0xf] }
 0x248   : > { %v1047_v6 = vsel %vm453_vm3, %v1042_v61, %v1044_v4  ;;  %v1358_v13 = vld [vmem:[#allocation2 + $0x20] sm:$0xff]  ;;  %v1357_v11 = vld [vmem:[#allocation2 + $0x18] sm:$0xff]  ;;  %v1138_v14 = vpop.permute.xlu0 %1137 }
 0x249   : > { %1053 = vst.msk [vmem:[#allocation2 + $0x28] sm:$0xf] %vm411_vm0, %v1047_v6  ;;  %v2597_v60 = vpack.c.bf16 %v1358_v13, %v1355_v5  ;;  %v2599_v15 = vpack.c.bf16 %v1357_v11, %v1354_v9  ;;  %v1141_v0 = vsel %vm551_vm6, %v1136_v47, %v1138_v14  ;;  %v1356_v47 = vld [vmem:[#allocation2 + $0x10] sm:$0xff]  ;;  %v1374_v5 = vld [vmem:[#allocation2 + $0xa0] sm:$0xff] }
 0x24a   : > { %1147 = vst.msk [vmem:[#allocation2 + $0x58] sm:$0xf] %vm411_vm0, %v1141_v0  ;;  %v2623_v6 = vpack.c.bf16 %v1377_v1, %v1374_v5  ;;  %v1813_v14 = vld [vmem:[%s3343_s20 + $0x2] sm:$0x3f] }
 0x24b   : > { %2598 = vmatprep.subr.bf16.mxu0 %v2597_v60  ;;  %v1091_v17 = vpop.permute.xlu1 %1090  ;;  %v1814_v60 = vunpack.c.l.bf16 %v1813_v14  ;;  %v1815_v0 = vunpack.c.h.bf16 %v1813_v14 }
 0x24c   : > { %v1094_v62 = vsel %vm502_vm5, %v1089_v39, %v1091_v17  ;;  %2600 = vmatpush1.bf16.msra.mxu0 %v2599_v15  ;;  %v1364_v20 = vld [vmem:[#allocation2 + $0x50] sm:$0xff]  ;;  %v1363_v22 = vld [vmem:[#allocation2 + $0x48] sm:$0xff]  ;;  %v1280_v23 = vpop.permute.xlu0 %1279 }
 0x24d   : > { %1100 = vst.msk [vmem:[#allocation2 + $0x40] sm:$0xf] %vm411_vm0, %v1094_v62  ;;  %v2601_v24 = vpack.c.bf16 %v1364_v20, %v1361_v18  ;;  %v2603_v7 = vpack.c.bf16 %v1363_v22, %v1360_v21  ;;  %v1283_v10 = vsel %vm702_vm9, %v1278_v49, %v1280_v23  ;;  %v1284_v29 = vsel %vm702_vm9, %v1280_v23, %v3389_v30  ;;  %v1370_v61 = vld [vmem:[#allocation2 + $0x80] sm:$0xff]  ;;  %v1369_v39 = vld [vmem:[#allocation2 + $0x78] sm:$0xff] }
 0x24e   : > { %1288 = vst [vmem:[#allocation2 + $0xa8] sm:$0xf] %v1283_v10  ;;  %1289 = vst [vmem:[#allocation2 + $0xb0] sm:$0xf] %v1284_v29  ;;  %v2605_v38 = vpack.c.bf16 %v1370_v61, %v3348_v54  ;;  %v2607_v50 = vpack.c.bf16 %v1369_v39, %v3351_v57  ;;  %v1818_v15 = vcombine.low %v1814_v60, %v1814_v60 }
 0x24f   : > { %2602 = vmatprep.subr.bf16.mxu0 %v2601_v24  ;;  %v1240_v36 = vpop.permute.xlu1 %1239  ;;  %v1819_v17 = vcombine.low %v1815_v0, %v1815_v0  ;;  %v1858_v62 = vcombine.low %v3376_v25, %v3376_v25 }
 0x250   : > { %v1243_v44 = vsel %vm660_vm8, %v3393_v48, %v1240_v36  ;;  %v1244_v46 = vsel %vm660_vm8, %v1240_v36, %v3384_v12  ;;  %2604 = vmatpush1.bf16.msra.mxu0 %v2603_v7  ;;  %v1359_v2 = vld [vmem:[#allocation2 + $0x28] sm:$0xff]  ;;  %v1322_v30 = vpop.permute.xlu0 %1321  ;;  %1820 = vrot.lane.b32.xlu1 %v1818_v15, %s2961_s22 }
 0x251   : > { %1248 = vst [vmem:[#allocation2 + $0x90] sm:$0xf] %v1243_v44  ;;  %1249 = vst [vmem:[#allocation2 + $0x98] sm:$0xf] %v1244_v46  ;;  %2606 = vmatprep.subr.bf16.mxu0 %v2605_v38  ;;  %v2614_v49 = vpack.c.bf16 %v1359_v2, %v1356_v47  ;;  %v1365_v48 = vld [vmem:[#allocation2 + $0x58] sm:$0xff]  ;;  %v2921_v18 = vpack.i.bf16 %v1819_v17, %v1814_v60 }
 0x252   : > { %1330 = vst.msk [vmem:[#allocation2 + $0xd0] sm:$0xf] %vm411_vm0, %v1322_v30 }
 0x253   : > { %2615 = vmatpush3.bf16.msra.mxu1 %v2614_v49  ;;  %v2873_v54 = vpop.permute.xlu1 %2872  ;;  %2922 = vrot.lane.b32.xlu0 %v2921_v18, %s2961_s22 }
 0x254   : > { %v2875_v51 = vunpack.i.h.bf16 %v2873_v54  ;;  %v2874_v32 = vunpack.i.l.bf16 %v2873_v54  ;;  %2608 = vmatpush1.bf16.msra.mxu0 %v2607_v50  ;;  %2616 = vmatprep.subr.bf16.mxu1 %v2959_v33  ;;  %v1362_v12 = vld [vmem:[#allocation2 + $0x40] sm:$0xff]  ;;  %v1318_v41 = vpop.permute.xlu0 %1317 }
 0x255   : > { %v2617_v27 = vpack.c.bf16 %v1365_v48, %v1362_v12  ;;  %v1376_v57 = vld [vmem:[#allocation2 + $0xb0] sm:$0xff]  ;;  %v1375_v53 = vld [vmem:[#allocation2 + $0xa8] sm:$0xff]  ;;  %1860 = vrot.lane.b32.xlu1 %v1858_v62, %s2962_s23 }
 0x256   : > { %1351 = vst.msk [vmem:[#allocation2 + $0xd0] sm:$0xf0] %vm436_vm1, %v2875_v51  ;;  %v1345_v35 = vsel %vm744_vm10, %v2874_v32, %v2875_v51 }
 0x257   : > { %1350 = vst [vmem:[#allocation2 + $0xc8] sm:$0xf0] %v1345_v35  ;;  %2618 = vmatpush3.bf16.msra.mxu1 %v2617_v27  ;;  %v1320_v37 = vpop.permute.xlu1 %1319 }
 0x258   : > { %v1323_v43 = vsel %vm744_vm10, %v1318_v41, %v1320_v37  ;;  %v1324_v42 = vsel %vm744_vm10, %v1320_v37, %v1322_v30  ;;  %2619 = vmatprep.subr.bf16.mxu1 %v2959_v33  ;;  %v1373_v45 = vld [vmem:[#allocation2 + $0x98] sm:$0xff]  ;;  %v1372_v52 = vld [vmem:[#allocation2 + $0x90] sm:$0xff] }
 0x259   : > { %1328 = vst [vmem:[#allocation2 + $0xc0] sm:$0xf] %v1323_v43  ;;  %1329 = vst [vmem:[#allocation2 + $0xc8] sm:$0xf] %v1324_v42  ;;  %v2609_v55 = vpack.c.bf16 %v1376_v57, %v1373_v45  ;;  %v2611_v63 = vpack.c.bf16 %v1375_v53, %v1372_v52 }
 0x25b   : > { %2610 = vmatprep.subr.bf16.mxu0 %v2609_v55  ;;  %2621 = vmatpush3.bf16.msra.mxu1 %v2620_v56  ;;  %v1339_v3 = vpop.permute.xlu1 %1338 }
 0x25c   : > { %v1344_v4 = vsel %vm744_vm10, %v1339_v3, %v2874_v32  ;;  %2612 = vmatpush1.bf16.msra.mxu0 %v2611_v63  ;;  %2622 = vmatprep.subr.bf16.mxu1 %v2959_v33 }
 0x25d   : > { %1349 = vst [vmem:[#allocation2 + $0xc0] sm:$0xf0] %v1344_v4  ;;  %v1380_v9 = vld [vmem:[#allocation2 + $0xd0] sm:$0xff] }
 0x25f   : > { %2624 = vmatpush3.bf16.msra.mxu1 %v2623_v6  ;;  %v2878_v22 = vpop.permute.xlu1 %2877 }
 0x260   : > { %v1379_v13 = vld [vmem:[#allocation2 + $0xc8] sm:$0xff]  ;;  %2538 = vmatprep.subr.mxu1 %v2964_v16  ;;  %v2880_v7 = vunpack.i.h.bf16 %v2878_v22  ;;  %v2879_v10 = vunpack.i.l.bf16 %v2878_v22 }
 0x261   : > { %1407 = vmatprep.subr.mxu0 %v1379_v13 }
 0x262   : > { %v1585_v61 = vsel %vm402_vm4, %v2879_v10, %v2880_v7 }
 0x263   : > { %2539 = vmatpush3.msra.mxu1 %v1380_v9  ;;  %1591 = vst [vmem:[#allocation2 + $0x8] sm:$0xf0] %v1585_v61  ;;  %v2898_v25 = vpop.permute.xlu1 %2897 }
 0x264   : > { %2541 = vmatmul.mubr.msk.f32.vlgmr.msra.gmra.mrb[2].mxu1 %vm808_vm11, %v2450_v58  ;;  %v1378_v11 = vld [vmem:[#allocation2 + $0xc0] sm:$0xff]  ;;  %2641 = vmatprep.subr.bf16.mxu1 %v2959_v33  ;;  %v2900_v44 = vunpack.i.h.bf16 %v2898_v25  ;;  %v2899_v46 = vunpack.i.l.bf16 %v2898_v25 }
 0x265   : > { %1408 = vmatpush1.msra.mxu0 %v1378_v11  ;;  %2561 = vmatprep.mubr.msk.f32.mxu1 %vm2965_vm2, %v2964_v16  ;;  %v3448_v20 = vpop.permute.xlu0 %1385 }
 0x266   : > { %2452 = vmatmul.mubr.msk.f32.vlgmr.msra.gmra.mrb[2].mxu0 %vm808_vm11, %v2450_v58  ;;  %v1679_v30 = vsel %vm502_vm5, %v2899_v46, %v2900_v44 }
 0x267   : > { %2017 = vmatprep.mubr.f32.mxu0 %v2964_v16  ;;  %1685 = vst [vmem:[#allocation2 + $0x38] sm:$0xf0] %v1679_v30  ;;  %v2918_v50 = vpop.permute.xlu1 %2917 }
 0x268   : > { %v2920_v32 = vunpack.i.h.bf16 %v2918_v50  ;;  %v2919_v12 = vunpack.i.l.bf16 %v2918_v50 }
 0x269   : > { %v2883_v21 = vpop.permute.xlu0 %2882 }
 0x26a   : > { %v2885_v23 = vunpack.i.h.bf16 %v2883_v21  ;;  %v2884_v24 = vunpack.i.l.bf16 %v2883_v21  ;;  %1793 = vst.msk [vmem:[#allocation2 + $0x88] sm:$0xf0] %vm436_vm1, %v2920_v32  ;;  %v1787_v35 = vsel %vm618_vm7, %v2919_v12, %v2920_v32  ;;  %v1893_v32 = vld [vmem:[%s3343_s20 + $0x2] sm:$0x3f] }
 0x26b   : > { %1792 = vst [vmem:[#allocation2 + $0x80] sm:$0xf0] %v1787_v35  ;;  %v1781_v41 = vpop.permute.xlu1 %1780 }
 0x26c   : > { %v1632_v29 = vsel %vm453_vm3, %v2884_v24, %v2885_v23  ;;  %v1786_v43 = vsel %vm618_vm7, %v1781_v41, %v2919_v12 }
 0x26d   : > { %1638 = vst [vmem:[#allocation2 + $0x20] sm:$0xf0] %v1632_v29  ;;  %v2888_v36 = vpop.permute.xlu0 %2887  ;;  %1791 = vst [vmem:[#allocation2 + $0x78] sm:$0xf0] %v1786_v43 }
 0x26e   : > { %v2890_v38 = vunpack.i.h.bf16 %v2888_v36  ;;  %v2889_v39 = vunpack.i.l.bf16 %v2888_v36 }
 0x26f   : > { %v2928_v52 = vpop.permute.xlu1 %2927 }
 0x270   : > { %v1586_v47 = vsel %vm402_vm4, %v2880_v7, %v2890_v38  ;;  %v1584_v2 = vsel %vm402_vm4, %v2889_v39, %v2879_v10  ;;  %v2930_v56 = vunpack.i.h.bf16 %v2928_v52  ;;  %v2929_v63 = vunpack.i.l.bf16 %v2928_v52 }
 0x271   : > { %1592 = vst.msk [vmem:[#allocation2 + $0x10] sm:$0xf0] %vm436_vm1, %v1586_v47  ;;  %1590 = vst [vmem:[#allocation2] sm:$0xf0] %v1584_v2  ;;  %v2893_v49 = vpop.permute.xlu0 %2892 }
 0x272   : > { %v2895_v54 = vunpack.i.h.bf16 %v2893_v49  ;;  %v2894_v51 = vunpack.i.l.bf16 %v2893_v49  ;;  %1873 = vst.msk [vmem:[#allocation2 + $0xb8] sm:$0xf0] %vm436_vm1, %v2930_v56  ;;  %v1867_v4 = vsel %vm702_vm9, %v2929_v63, %v2930_v56 }
 0x273   : > { %1872 = vst [vmem:[#allocation2 + $0xb0] sm:$0xf0] %v1867_v4 }
 0x274   : > { %v1631_v48 = vsel %vm453_vm3, %v2894_v51, %v2884_v24  ;;  %v1633_v27 = vsel %vm453_vm3, %v2885_v23, %v2895_v54 }
 0x275   : > { %1637 = vst [vmem:[#allocation2 + $0x18] sm:$0xf0] %v1631_v48  ;;  %1639 = vst.msk [vmem:[#allocation2 + $0x28] sm:$0xf0] %vm436_vm1, %v1633_v27  ;;  %v2903_v34 = vpop.permute.xlu0 %2902  ;;  %v1895_v48 = vunpack.c.h.bf16 %v1893_v32  ;;  %v1894_v27 = vunpack.c.l.bf16 %v1893_v32 }
 0x276   : > { %v2905_v37 = vunpack.i.h.bf16 %v2903_v34  ;;  %v2904_v57 = vunpack.i.l.bf16 %v2903_v34 }
 0x277   : > { %v1899_v35 = vcombine.low %v1895_v48, %v1895_v48 }
 0x278   : > { %v1726_v42 = vsel %vm551_vm6, %v2904_v57, %v2905_v37 }
 0x279   : > { %1732 = vst [vmem:[#allocation2 + $0x50] sm:$0xf0] %v1726_v42  ;;  %v2908_v45 = vpop.permute.xlu0 %2907  ;;  %v2931_v34 = vpack.i.bf16 %v1899_v35, %v1894_v27 }
 0x27a   : > { %v2910_v53 = vunpack.i.h.bf16 %v2908_v45  ;;  %v2909_v55 = vunpack.i.l.bf16 %v2908_v45 }
 0x27c   : > { %v1678_v1 = vsel %vm502_vm5, %v2909_v55, %v2899_v46  ;;  %v1680_v3 = vsel %vm502_vm5, %v2900_v44, %v2910_v53 }
 0x27d   : > { %1684 = vst [vmem:[#allocation2 + $0x30] sm:$0xf0] %v1678_v1  ;;  %1686 = vst.msk [vmem:[#allocation2 + $0x40] sm:$0xf0] %vm436_vm1, %v1680_v3  ;;  %v2913_v5 = vpop.permute.xlu0 %2912 }
 0x27e   : > { %v2915_v6 = vunpack.i.h.bf16 %v2913_v5  ;;  %v2914_v13 = vunpack.i.l.bf16 %v2913_v5 }
 0x280   : > { %v1725_v58 = vsel %vm551_vm6, %v2914_v13, %v2904_v57  ;;  %v1727_v9 = vsel %vm551_vm6, %v2905_v37, %v2915_v6  ;;  %v1898_v37 = vcombine.low %v1894_v27, %v1894_v27  ;;  %v2455_v57 = vld [vmem:[%s3599_s6 + $0x8] sm:$0xf] }
 0x281   : > { %1731 = vst [vmem:[#allocation2 + $0x48] sm:$0xf0] %v1725_v58  ;;  %1733 = vst.msk [vmem:[#allocation2 + $0x58] sm:$0xf0] %vm436_vm1, %v1727_v9 }
 0x2c2   : > { %v1821_v11 = vpop.permute.xlu1 %1820 }
 0x2c5   : > { %v2923_v14 = vpop.permute.xlu0 %2922 }
 0x2c6   : > { %v2925_v15 = vunpack.i.h.bf16 %v2923_v14  ;;  %v2924_v0 = vunpack.i.l.bf16 %v2923_v14 }
 0x2c7   : > { %v1861_v60 = vpop.permute.xlu1 %1860 }
 0x2c8   : > { %v1866_v17 = vsel %vm702_vm9, %v1861_v60, %v2929_v63  ;;  %1833 = vst.msk [vmem:[#allocation2 + $0xa0] sm:$0xf0] %vm436_vm1, %v2925_v15  ;;  %v1826_v18 = vsel %vm660_vm8, %v1821_v11, %v2924_v0  ;;  %v1827_v62 = vsel %vm660_vm8, %v2924_v0, %v2925_v15 }
 0x2c9   : > { %1871 = vst [vmem:[#allocation2 + $0xa8] sm:$0xf0] %v1866_v17  ;;  %1831 = vst [vmem:[#allocation2 + $0x90] sm:$0xf0] %v1826_v18 }
 0x2ca   : > { %1832 = vst [vmem:[#allocation2 + $0x98] sm:$0xf0] %v1827_v62 }
 0x337   : > { %v1528_v21 = vpop.f32.mrb[2].mxu1 }
 0x338   : > { %v1529_v22 = vadd.f32 %v1528_v21, %v3448_v20  ;;  %v2542_v23 = vpop.f32.mrb[3].mxu1 }
 0x339   : > { %v1457_v24 = vpop.f32.mrb[2].mxu0 }
 0x33a   : > { %v1534_v7 = vmax.f32 %v1529_v22, 0.0  ;;  %v1458_v10 = vadd.f32 %v1457_v24, %v3448_v20  ;;  %v1459_v29 = vpop.f32.mrb[3].mxu0 }
 0x33b   : > { %v1460_v61 = vadd.f32 %v1459_v29, %v3448_v20 }
 0x33c   : > { %v1537_v36 = vmul.f32 %v1534_v7, %v3302_v8  ;;  %v1532_v25 = vmax.f32 %v1458_v10, 0.0 }
 0x33d   : > { %v1533_v38 = vmax.f32 %v1460_v61, 0.0 }
 0x33e   : > { %1545 = vst.msk [vmem:[#allocation4 + $0xc] sm:$0xf] %vm411_vm0, %v1537_v36  ;;  %v1535_v39 = vmul.f32 %v1532_v25, %v3307_v31 }
 0x33f   : > { %v1536_v44 = vmul.f32 %v1533_v38, %v3313_v40 }
 0x341   : > { %v1542_v46 = vcombine.low %v1535_v39, %v1536_v44  ;;  %v2946_v47 = vcombine.low %v1536_v44, %v1536_v44 }
 0x343   : > { %1544 = vst [vmem:[#allocation4 + $0x4] sm:$0xff] %v1542_v46  ;;  %1739 = vst [vmem:[#allocation2 + $0x60] sm:$0xf] %v1542_v46 }
 0x344   : > { %1740 = vst [vmem:[#allocation2 + $0x68] sm:$0xf] %v2946_v47 }
 0x345   : > { %v1735_v2 = vld [vmem:[#allocation4 + $0xc] sm:$0xf] }
 0x346   : > { %v1795_v30 = vld [vmem:[#allocation4 + $0xc] sm:$0xf]  ;;  %1741 = vst.msk [vmem:[#allocation2 + $0x70] sm:$0xf] %vm411_vm0, %v1735_v2 }
 0x347   : > { %v1755_v49 = vld [vmem:[#allocation4 + $0xc] sm:$0xf]  ;;  %1803 = vrot.lane.b32.xlu1 %v1795_v30, %s2961_s22 }
 0x348   : > { %1763 = vrot.lane.b32.xlu0 %v1755_v49, %s2960_s18  ;;  %v1835_v20 = vld [vmem:[#allocation4 + $0xc] sm:$0xf] }
 0x349   : > { %v1875_v41 = vld [vmem:[#allocation4 + $0xc] sm:$0xf] }
 0x34a   : > { %v1594_v50 = vld [vmem:[#allocation4 + $0x8] sm:$0xff]  ;;  %v1546_v54 = vld [vmem:[#allocation4] sm:$0xff] }
 0x34b   : > { %1603 = vrot.lane.b32.xlu1 %v1594_v50, %s2955_s14  ;;  %v1550_v51 = vcombine.high %v1546_v54, %v1546_v54  ;;  %v1598_v12 = vcombine.high %v1594_v50, %v1594_v50 }
 0x34c   : > { %1843 = vrot.lane.b32.xlu0 %v1835_v20, %s2962_s23 }
 0x34f   : > { %1552 = vrot.lane.b32.xlu1 %v1546_v54, %s2956_s15 }
 0x350   : > { %1556 = vrot.lane.b32.xlu0 %v1594_v50, %s2956_s15 }
 0x353   : > { %1599 = vrot.lane.b32.xlu1 %v1546_v54, %s2955_s14 }
 0x354   : > { %1650 = vrot.lane.b32.xlu0 %v1594_v50, %s2957_s16 }
 0x357   : > { %1697 = vrot.lane.b32.xlu1 %v1594_v50, %s2958_s17 }
 0x358   : > { %1759 = vrot.lane.b32.xlu0 %v1542_v46, %s2960_s18 }
 0x35b   : > { %1646 = vrot.lane.b32.xlu1 %v1546_v54, %s2957_s16 }
 0x35c   : > { %1799 = vrot.lane.b32.xlu0 %v1542_v46, %s2961_s22 }
 0x35f   : > { %1693 = vrot.lane.b32.xlu1 %v1546_v54, %s2958_s17 }
 0x360   : > { %1839 = vrot.lane.b32.xlu0 %v1542_v46, %s2962_s23 }
 0x363   : > { %1554 = vrot.lane.b32.xlu1 %v1550_v51, %s2956_s15 }
 0x364   : > { %1601 = vrot.lane.b32.xlu0 %v1550_v51, %s2955_s14 }
 0x367   : > { %1648 = vrot.lane.b32.xlu1 %v1550_v51, %s2957_s16 }
 0x368   : > { %1695 = vrot.lane.b32.xlu0 %v1550_v51, %s2958_s17 }
 0x36b   : > { %1558 = vrot.lane.b32.xlu1 %v1598_v12, %s2956_s15 }
 0x36c   : > { %1605 = vrot.lane.b32.xlu0 %v1598_v12, %s2955_s14 }
 0x36f   : > { %1761 = vrot.lane.b32.xlu1 %v2946_v47, %s2960_s18 }
 0x370   : > { %1652 = vrot.lane.b32.xlu0 %v1598_v12, %s2957_s16 }
 0x373   : > { %1699 = vrot.lane.b32.xlu1 %v1598_v12, %s2958_s17 }
 0x374   : > { %1801 = vrot.lane.b32.xlu0 %v2946_v47, %s2961_s22 }
 0x377   : > { %1841 = vrot.lane.b32.xlu1 %v2946_v47, %s2962_s23 }
 0x378   : > { %2932 = vrot.lane.b32.xlu0 %v2931_v34, %s2963_s24 }
 0x37b   : > { %1883 = vrot.lane.b32.xlu1 %v1875_v41, %s2963_s24 }
 0x37c   : > { %1881 = vrot.lane.b32.xlu0 %v2946_v47, %s2963_s24 }
 0x37f   : > { %1879 = vrot.lane.b32.xlu1 %v1542_v46, %s2963_s24 }
 0x380   : > { %1900 = vrot.lane.b32.xlu0 %v1898_v37, %s2963_s24 }
 0x383   : > { %1947 = vperm.xlu1 %2936, %v2455_v57  }
 0x3b9   : > { %v3517_v43 = vpop.permute.xlu1 %1803 }
 0x3ba   : > { %v1764_v42 = vpop.permute.xlu0 %1763  ;;  %1812 = vst.msk [vmem:[#allocation2 + $0xa0] sm:$0xf] %vm411_vm0, %v3517_v43 }
 0x3bb   : > { %1772 = vst.msk [vmem:[#allocation2 + $0x88] sm:$0xf] %vm411_vm0, %v1764_v42 }
 0x3bd   : > { %v1604_v52 = vpop.permute.xlu1 %1603 }
 0x3be   : > { %v3522_v45 = vpop.permute.xlu0 %1843 }
 0x3bf   : > { %1852 = vst.msk [vmem:[#allocation2 + $0xb8] sm:$0xf] %vm411_vm0, %v3522_v45 }
 0x3c1   : > { %v1553_v55 = vpop.permute.xlu1 %1552 }
 0x3c2   : > { %v1557_v53 = vpop.permute.xlu0 %1556 }
 0x3c5   : > { %v1600_v63 = vpop.permute.xlu1 %1599 }
 0x3c6   : > { %v1651_v56 = vpop.permute.xlu0 %1650 }
 0x3c9   : > { %v1698_v3 = vpop.permute.xlu1 %1697 }
 0x3ca   : > { %v1760_v1 = vpop.permute.xlu0 %1759 }
 0x3cd   : > { %v1647_v5 = vpop.permute.xlu1 %1646 }
 0x3ce   : > { %v1800_v4 = vpop.permute.xlu0 %1799 }
 0x3d1   : > { %v1694_v13 = vpop.permute.xlu1 %1693 }
 0x3d2   : > { %v3526_v6 = vpop.permute.xlu0 %1839 }
 0x3d5   : > { %v1555_v14 = vpop.permute.xlu1 %1554 }
 0x3d6   : > { %v1602_v58 = vpop.permute.xlu0 %1601  ;;  %v1560_v60 = vsel %vm402_vm4, %v1553_v55, %v1555_v14  ;;  %v1561_v15 = vsel %vm402_vm4, %v1555_v14, %v1557_v53 }
 0x3d7   : > { %v1607_v9 = vsel %vm453_vm3, %v1600_v63, %v1602_v58  ;;  %v1608_v11 = vsel %vm453_vm3, %v1602_v58, %v1604_v52  ;;  %1566 = vst [vmem:[#allocation2] sm:$0xf] %v1560_v60  ;;  %1567 = vst [vmem:[#allocation2 + $0x8] sm:$0xf] %v1561_v15 }
 0x3d8   : > { %1613 = vst [vmem:[#allocation2 + $0x18] sm:$0xf] %v1607_v9  ;;  %1614 = vst [vmem:[#allocation2 + $0x20] sm:$0xf] %v1608_v11 }
 0x3d9   : > { %v1649_v62 = vpop.permute.xlu1 %1648 }
 0x3da   : > { %v1696_v0 = vpop.permute.xlu0 %1695  ;;  %v1654_v21 = vsel %vm502_vm5, %v1647_v5, %v1649_v62  ;;  %v1655_v22 = vsel %vm502_vm5, %v1649_v62, %v1651_v56 }
 0x3db   : > { %v1701_v17 = vsel %vm551_vm6, %v1694_v13, %v1696_v0  ;;  %v1702_v18 = vsel %vm551_vm6, %v1696_v0, %v1698_v3  ;;  %1660 = vst [vmem:[#allocation2 + $0x30] sm:$0xf] %v1654_v21  ;;  %1661 = vst [vmem:[#allocation2 + $0x38] sm:$0xf] %v1655_v22  ;;  %v1933_v0 = vld [vmem:[#allocation2 + $0x88] sm:$0xff]  ;;  %v1930_v21 = vld [vmem:[#allocation2 + $0x70] sm:$0xff] }
 0x3dc   : > { %1707 = vst [vmem:[#allocation2 + $0x48] sm:$0xf] %v1701_v17  ;;  %1708 = vst [vmem:[#allocation2 + $0x50] sm:$0xf] %v1702_v18 }
 0x3dd   : > { %v1559_v7 = vpop.permute.xlu1 %1558 }
 0x3de   : > { %v1606_v23 = vpop.permute.xlu0 %1605  ;;  %v1562_v61 = vsel %vm402_vm4, %v1557_v53, %v1559_v7  ;;  %v1917_v36 = vld [vmem:[#allocation2 + $0x8] sm:$0xff]  ;;  %v1916_v25 = vld [vmem:[#allocation2] sm:$0xff]  ;;  %vm2329_vm4 = vcmask 4096  }
 0x3df   : > { %v1609_v24 = vsel %vm453_vm3, %v1604_v52, %v1606_v23  ;;  %v1920_v10 = vld [vmem:[#allocation2 + $0x20] sm:$0xff]  ;;  %v1919_v29 = vld [vmem:[#allocation2 + $0x18] sm:$0xff]  ;;  %1568 = vst.msk [vmem:[#allocation2 + $0x10] sm:$0xf] %vm411_vm0, %v1562_v61  ;;  %vm2305_vm3 = vcmask 36896  }
 0x3e0   : > { %1615 = vst.msk [vmem:[#allocation2 + $0x28] sm:$0xf] %vm411_vm0, %v1609_v24  ;;  %v2625_v38 = vpack.c.bf16 %v1920_v10, %v1917_v36  ;;  %v2627_v39 = vpack.c.bf16 %v1919_v29, %v1916_v25  ;;  %v2648_v29 = vpack.c.bf16 %v1933_v0, %v1930_v21  ;;  %v1939_v36 = vld [vmem:[#allocation2 + $0xb8] sm:$0xff] }
 0x3e1   : > { %v1762_v47 = vpop.permute.xlu1 %1761 }
 0x3e2   : > { %v1653_v44 = vpop.permute.xlu0 %1652  ;;  %2626 = vmatprep.subr.bf16.mxu0 %v2625_v38  ;;  %v1765_v49 = vsel %vm618_vm7, %v1760_v1, %v1762_v47  ;;  %v1766_v20 = vsel %vm618_vm7, %v1762_v47, %v1764_v42  ;;  %v1923_v50 = vld [vmem:[#allocation2 + $0x38] sm:$0xff]  ;;  %v1922_v54 = vld [vmem:[#allocation2 + $0x30] sm:$0xff]  ;;  %v1929_v1 = vld [vmem:[#allocation2 + $0x68] sm:$0xff] }
 0x3e3   : > { %v1656_v46 = vsel %vm502_vm5, %v1651_v56, %v1653_v44  ;;  %v1926_v2 = vld [vmem:[#allocation2 + $0x50] sm:$0xff]  ;;  %v1925_v30 = vld [vmem:[#allocation2 + $0x48] sm:$0xff]  ;;  %2628 = vmatpush1.bf16.msra.mxu0 %v2627_v39  ;;  %1770 = vst [vmem:[#allocation2 + $0x78] sm:$0xf] %v1765_v49  ;;  %1771 = vst [vmem:[#allocation2 + $0x80] sm:$0xf] %v1766_v20 }
 0x3e4   : > { %1662 = vst.msk [vmem:[#allocation2 + $0x40] sm:$0xf] %vm411_vm0, %v1656_v46  ;;  %v2629_v51 = vpack.c.bf16 %v1926_v2, %v1923_v50  ;;  %v2631_v32 = vpack.c.bf16 %v1925_v30, %v1922_v54  ;;  %v1928_v56 = vld [vmem:[#allocation2 + $0x60] sm:$0xff]  ;;  %v2454_v44 = vld [vmem:[%s3598_s5 + $0x8] sm:$0xf] }
 0x3e5   : > { %v1700_v35 = vpop.permute.xlu1 %1699  ;;  %v1936_v38 = vld [vmem:[#allocation2 + $0xa0] sm:$0xff] }
 0x3e6   : > { %v1802_v12 = vpop.permute.xlu0 %1801  ;;  %2630 = vmatprep.subr.bf16.mxu0 %v2629_v51  ;;  %v1703_v41 = vsel %vm551_vm6, %v1698_v3, %v1700_v35  ;;  %v1918_v37 = vld [vmem:[#allocation2 + $0x10] sm:$0xff]  ;;  %v2651_v39 = vpack.c.bf16 %v1939_v36, %v1936_v38 }
 0x3e7   : > { %v1805_v48 = vsel %vm660_vm8, %v1800_v4, %v1802_v12  ;;  %v1806_v27 = vsel %vm660_vm8, %v1802_v12, %v3517_v43  ;;  %v1921_v34 = vld [vmem:[#allocation2 + $0x28] sm:$0xff]  ;;  %2632 = vmatpush1.bf16.msra.mxu0 %v2631_v32  ;;  %1709 = vst.msk [vmem:[#allocation2 + $0x58] sm:$0xf] %vm411_vm0, %v1703_v41  ;;  %v2447_v41 = vld [vmem:[%s3288_s13 + $0x1] ss:$2 sm:$0x7] }
 0x3e8   : > { %1810 = vst [vmem:[#allocation2 + $0x90] sm:$0xf] %v1805_v48  ;;  %1811 = vst [vmem:[#allocation2 + $0x98] sm:$0xf] %v1806_v27  ;;  %v2642_v57 = vpack.c.bf16 %v1921_v34, %v1918_v37  ;;  %v2260_v37 = vrot.slane %v2447_v41, %v3297_v26 }
 0x3e9   : > { %v1842_v55 = vpop.permute.xlu1 %1841 }
 0x3ea   : > { %v2933_v42 = vpop.permute.xlu0 %2932  ;;  %2643 = vmatpush3.bf16.msra.mxu1 %v2642_v57  ;;  %v1845_v43 = vsel %vm702_vm9, %v3526_v6, %v1842_v55  ;;  %v1846_v63 = vsel %vm702_vm9, %v1842_v55, %v3522_v45  ;;  %v1932_v4 = vld [vmem:[#allocation2 + $0x80] sm:$0xff]  ;;  %v1931_v3 = vld [vmem:[#allocation2 + $0x78] sm:$0xff] }
 0x3eb   : > { %v2935_v52 = vunpack.i.h.bf16 %v2933_v42  ;;  %v2934_v53 = vunpack.i.l.bf16 %v2933_v42  ;;  %2644 = vmatprep.subr.bf16.mxu1 %v2959_v33  ;;  %1850 = vst [vmem:[#allocation2 + $0xa8] sm:$0xf] %v1845_v43  ;;  %1851 = vst [vmem:[#allocation2 + $0xb0] sm:$0xf] %v1846_v63  ;;  %v2633_v13 = vpack.c.bf16 %v1932_v4, %v1929_v1  ;;  %v2635_v58 = vpack.c.bf16 %v1931_v3, %v1928_v56  ;;  %v1924_v45 = vld [vmem:[#allocation2 + $0x40] sm:$0xff] }
 0x3ed   : > { %1913 = vst.msk [vmem:[#allocation2 + $0xd0] sm:$0xf0] %vm436_vm1, %v2935_v52  ;;  %v1907_v5 = vsel %vm744_vm10, %v2934_v53, %v2935_v52  ;;  %2634 = vmatprep.subr.bf16.mxu0 %v2633_v13  ;;  %v1884_v6 = vpop.permute.xlu1 %1883  ;;  %vm2275_vm1 = vcmask 1044480  }
 0x3ee   : > { %1912 = vst [vmem:[#allocation2 + $0xc8] sm:$0xf0] %v1907_v5  ;;  %v1882_v9 = vpop.permute.xlu0 %1881  ;;  %1892 = vst.msk [vmem:[#allocation2 + $0xd0] sm:$0xf] %vm411_vm0, %v1884_v6  ;;  %2636 = vmatpush1.bf16.msra.mxu0 %v2635_v58  ;;  %v1927_v14 = vld [vmem:[#allocation2 + $0x58] sm:$0xff]  ;;  %vm2289_vm0 = vcmask 548864  }
 0x3ef   : > { %v1886_v11 = vsel %vm744_vm10, %v1882_v9, %v1884_v6  ;;  %v2645_v60 = vpack.c.bf16 %v1927_v14, %v1924_v45  ;;  %v1935_v62 = vld [vmem:[#allocation2 + $0x98] sm:$0xff]  ;;  %v1934_v24 = vld [vmem:[#allocation2 + $0x90] sm:$0xff] }
 0x3f0   : > { %1891 = vst [vmem:[#allocation2 + $0xc8] sm:$0xf] %v1886_v11 }
 0x3f1   : > { %2646 = vmatpush3.bf16.msra.mxu1 %v2645_v60  ;;  %v1880_v18 = vpop.permute.xlu1 %1879 }
 0x3f2   : > { %v1901_v15 = vpop.permute.xlu0 %1900  ;;  %v1885_v22 = vsel %vm744_vm10, %v1880_v18, %v1882_v9  ;;  %2647 = vmatprep.subr.bf16.mxu1 %v2959_v33  ;;  %v1938_v23 = vld [vmem:[#allocation2 + $0xb0] sm:$0xff]  ;;  %v1937_v7 = vld [vmem:[#allocation2 + $0xa8] sm:$0xff] }
 0x3f3   : > { %v1906_v17 = vsel %vm744_vm10, %v1901_v15, %v2934_v53  ;;  %1890 = vst [vmem:[#allocation2 + $0xc0] sm:$0xf] %v1885_v22  ;;  %v2637_v10 = vpack.c.bf16 %v1938_v23, %v1935_v62  ;;  %v2639_v61 = vpack.c.bf16 %v1937_v7, %v1934_v24 }
 0x3f4   : > { %1911 = vst [vmem:[#allocation2 + $0xc0] sm:$0xf0] %v1906_v17 }
 0x3f5   : > { %2638 = vmatprep.subr.bf16.mxu0 %v2637_v10  ;;  %2649 = vmatpush3.bf16.msra.mxu1 %v2648_v29  ;;  %v1942_v47 = vld [vmem:[#allocation2 + $0xd0] sm:$0xff] }
 0x3f6   : > { %2640 = vmatpush1.bf16.msra.mxu0 %v2639_v61  ;;  %2650 = vmatprep.subr.bf16.mxu1 %v2959_v33 }
 0x3f7   : > { %v1941_v25 = vld [vmem:[#allocation2 + $0xc8] sm:$0xff] }
 0x3f8   : > { %1969 = vmatprep.subr.mxu0 %v1941_v25 }
 0x3f9   : > { %2652 = vmatpush3.bf16.msra.mxu1 %v2651_v39 }
 0x3fa   : > { %2559 = vmatprep.subr.mxu1 %v2964_v16 }
 0x3fb   : > { %v1940_v46 = vld [vmem:[#allocation2 + $0xc0] sm:$0xff] }
 0x3fc   : > { %1970 = vmatpush1.msra.mxu0 %v1940_v46 }
 0x3fd   : > { %2456 = vmatmul.mubr.msk.f32.vlgmr.msra.gmra.mrb[4].mxu0 %vm808_vm11, %v2454_v44  ;;  %2560 = vmatpush3.msra.mxu1 %v1942_v47 }
 0x3fe   : > { %2179 = vmatprep.mubr.f32.mxu0 %v2964_v16  ;;  %2562 = vmatmul.mubr.msk.f32.vlgmr.msra.gmra.mrb[4].mxu1 %vm808_vm11, %v2454_v44 }
 0x3ff   : > { %2564 = vmatprep.subr.mxu1 %v2964_v16  ;;  %2566 = vmatprep.mubr.msk.f32.mxu1 %vm2965_vm2, %v2964_v16  ;;  %v2100_v16 = vld [vmem:[%s3600_s7] sm:$0x1f]  ;;  %vm2279_vm2 = vcmask 552960  }
 0x402   : > { %v1948_v33 = vpop.permute.xlu1 %1947 }
 0x4d0   : > { %v2019_v2 = vpop.f32.mrb[4].mxu0 }
 0x4d1   : > { %v2020_v30 = vadd.f32 %v2019_v2, %v1948_v33  ;;  %v2021_v49 = vpop.f32.mrb[5].mxu0  ;;  %v2090_v50 = vpop.f32.mrb[4].mxu1 }
 0x4d2   : > { %v2022_v20 = vadd.f32 %v2021_v49, %v1948_v33  ;;  %v2091_v51 = vadd.f32 %v2090_v50, %v1948_v33  ;;  %v2563_v32 = vpop.f32.mrb[5].mxu1 }
 0x4d3   : > { %v2094_v54 = vmax.f32 %v2020_v30, 0.0 }
 0x4d4   : > { %v2095_v12 = vmax.f32 %v2022_v20, 0.0  ;;  %v2096_v48 = vmax.f32 %v2091_v51, 0.0 }
 0x4d5   : > { %v2097_v35 = vmul.f32 %v2094_v54, %v3307_v31  ;;  %v2286_v31 = vsel %vm2285_vm15, %v2260_v37, 0.0 }
 0x4d6   : > { %v2098_v27 = vmul.f32 %v2095_v12, %v3313_v40  ;;  %v2099_v34 = vmul.f32 %v2096_v48, %v3302_v8  ;;  %v2264_v40 = vrot.slane %v2447_v41, %v963_v28  ;;  %v2268_v8 = vrot.slane %v2447_v41, %v967_v19 }
 0x4d8   : > { %2458 = vmatprep.subr.msk.mxu0 %vm2105_vm13, %v2098_v27  ;;  %2565 = vmatpush3.msk.msra.mxu1 %vm2105_vm13, %v2099_v34  ;;  %v2287_v57 = vsel %vm2285_vm15, %v2264_v40, 0.0  ;;  %v2290_v52 = vsel %vm2289_vm0, %v2268_v8, 0.0 }
 0x4d9   : > { %2459 = vmatpush1.msk.msra.mxu0 %vm2105_vm13, %v2097_v35  ;;  %2567 = vmatmul.mubr.msk.f32.vlgmr.msra.gmra.mrb[6].mxu1 %vm2101_vm14, %v2100_v16  ;;  %v2288_v42 = vadd.f32 %v2287_v57, %v2286_v31 }
 0x4da   : > { %2460 = vmatmul.mubr.msk.f32.vlgmr.msra.gmra.mrb[6].mxu0 %vm2101_vm14, %v2100_v16 }
 0x4db   : > { %v2291_v53 = vadd.f32 %v2290_v52, %v2288_v42 }
 0x4dd   : > { %2292 = vadd.xlane.f32.xlu0 %v2291_v53 }
 0x4f3   : > { %2301 = vrot.lane.b32.xlu0 %v2100_v16, %s2960_s18  ;;  %s2967_s18 = smov 124  }
 0x56a   : > { %v2293_v58 = vpop.xlane.xlu0 %2292 }
 0x56b   : > { %v2294_v9 = vmul.f32 0.00390625, %v2293_v58 }
 0x56d   : > { %v2298_v6 = vrot.slane %v2294_v9, %v3297_v26 }
 0x56e   : > { %v2302_v60 = vpop.permute.xlu0 %2301 }
 0x56f   : > { %v2299_v11 = vmul.f32 %v2298_v6, %v2100_v16 }
 0x5ac   : > { %v2252_v56 = vpop.f32.mrb[6].mxu1 }
 0x5ad   : > { %v2181_v55 = vpop.f32.mrb[6].mxu0  ;;  %v2274_v1 = vmul.f32 %v2268_v8, %v2252_v56  ;;  %v2568_v28 = vpop.f32.mrb[7].mxu1 }
 0x5ae   : > { %v2272_v43 = vmul.f32 %v2260_v37, %v2181_v55  ;;  %v2183_v63 = vpop.f32.mrb[7].mxu0 }
 0x5af   : > { %v2273_v4 = vmul.f32 %v2264_v40, %v2183_v63  ;;  %v2280_v59 = vsel %vm2279_vm2, %v2274_v1, 0.0 }
 0x5b0   : > { %v2276_v3 = vsel %vm2275_vm1, %v2272_v43, 0.0 }
 0x5b1   : > { %v2277_v5 = vsel %vm2275_vm1, %v2273_v4, 0.0 }
 0x5b2   : > { %v2278_v19 = vadd.f32 %v2277_v5, %v2276_v3 }
 0x5b4   : > { %v2281_v13 = vadd.f32 %v2280_v59, %v2278_v19 }
 0x5b6   : > { %2282 = vadd.xlane.f32.xlu1 %v2281_v13 }
 0x643   : > { %v2283_v45 = vpop.xlane.xlu1 %2282 }
 0x644   : > { %v2284_v14 = vmul.f32 0.00390625, %v2283_v45 }
 0x646   : > { %v2300_v15 = vadd.f32 %v2299_v11, %v2284_v14 }
 0x648   : > { %v2304_v0 = vadd.f32 %v2302_v60, %v2300_v15 }
 0x64a   : > { %v2306_v17 = vsel %vm2305_vm3, %v2304_v0, -inf }
 0x64b   : > { %v2307_v18 = vrot.slane %v2306_v17, 4 }
 0x64d   : > { %v2308_v62 = vmax.f32 %v2306_v17, %v2307_v18 }
 0x64f   : > { %v2309_v21 = vrot.slane %v2308_v62, 2 }
 0x651   : > { %v2310_v22 = vmax.f32 %v2308_v62, %v2309_v21 }
 0x653   : > { %v2311_v23 = vrot.slane %v2310_v22, 1 }
 0x655   : > { %v2312_v24 = vmax.f32 %v2310_v22, %v2311_v23 }
 0x657   : > { %v2313_v7 = vsub.f32 %v2304_v0, %v2312_v24 }
 0x659   : > { %v2314_v10 = vmul.f32 1.442695, %v2313_v7 }
 0x65b   : > { %2941 = vpow2.f32 %v2314_v10 }
 0x665   : > { %v2942_v29 = vpop.eup %2941 }
 0x666   : > { %v2316_v26 = vsel %vm2305_vm3, %v2942_v29, 0.0 }
 0x667   : > { %v2317_v61 = vrot.slane %v2316_v26, 4 }
 0x669   : > { %v2318_v36 = vadd.f32 %v2317_v61, %v2316_v26 }
 0x66b   : > { %v2319_v25 = vrot.slane %v2318_v36, 2 }
 0x66d   : > { %v2320_v38 = vadd.f32 %v2319_v25, %v2318_v36 }
 0x66f   : > { %v2321_v39 = vrot.slane %v2320_v38, 1 }
 0x671   : > { %v2322_v44 = vadd.f32 %v2321_v39, %v2320_v38 }
 0x673   : > { %2943 = vrcp.f32 %v2322_v44 }
 0x67d   : > { %v2944_v46 = vpop.eup %2943 }
 0x67e   : > { %v2324_v47 = vmul.f32 %v2944_v46, %v2942_v29 }
 0x680   : > { %2326 = vrot.lane.b32.xlu1 %v2324_v47, %s2967_s18 }
 0x6f2   : > { %v2327_v33 = vpop.permute.xlu1 %2326 }
 0x6f3   : > { %2330 = vst.msk [vmem:[%s383_s10] sm:$0x1f] %vm2329_vm4, %v2327_v33 }
 0x6f4 PF: > { %s18_s27 = sadd.s32 1, %s2953_s27  }
 0x6f5   : > { %p15_p4 = scmp.ge.s32.totalorder %s18_s27, 4  }
 0x6f7   :  { %17 = sbr.rel (!%p15_p4) target bundleno = 1 (0x1), region = 99 }

</bundles_post_ra>
